<compile_context>
chip_gen: v7x
topology: tpu7x:2x2x1
jax: 0.10.0
libtpu: 0.0.40
codegen_flags: <defaults>
</compile_context>

<pallas_src>
import functools

import jax
import jax.numpy as jnp
from jax.experimental import pallas as pl
from jax.experimental.pallas import tpu as pltpu


# ---------------------------------------------------------------------------
# Fused kernel
# ---------------------------------------------------------------------------

def _layer_norm(x, gamma, beta, eps=1e-5):
    # x: (N, E); gamma/beta: (1, E). PyTorch nn.LayerNorm (biased variance).
    mu = jnp.mean(x, axis=-1, keepdims=True)
    var = jnp.mean((x - mu) * (x - mu), axis=-1, keepdims=True)
    return (x - mu) * jax.lax.rsqrt(var + eps) * gamma + beta


def _fused_forward_kernel(tok_ref, table_ref, wqkv_ref, wproj_ref, w1_ref,
                          w2_ref, lnslab_ref, b1_ref, lnf_ref, woutb_ref,
                          o_ref, attn_scr,
                          *, num_layers, num_heads, head_size, seq_len,
                          max_length):
    bt = tok_ref.shape[0]               # B*T
    vocab = o_ref.shape[1]              # V
    embed = table_ref.shape[1]          # E
    hdim = num_heads * head_size        # NH*hs
    T = seq_len
    B = bt // T
    scale = head_size ** (-0.5)

    # ---- Fused token + positional embedding via ONE one-hot matmul ----------
    # one-hot columns: [0, V) = token id, [V, V+max_length) = clamped position.
    width = table_ref.shape[0]                                    # V + max_len
    col = jax.lax.broadcasted_iota(jnp.int32, (bt, width), 1)
    row = jax.lax.broadcasted_iota(jnp.int32, (bt, width), 0)
    t_idx = row % T
    pos_col = vocab + jnp.minimum(t_idx, max_length - 1)
    tok = tok_ref[...]                                            # (BT, 1) i32
    hit = jnp.logical_or(col == tok, col == pos_col)
    onehot = jnp.where(hit, 1.0, 0.0).astype(jnp.float32)         # (BT, V+ML)
    x = jnp.dot(onehot, table_ref[...],
                preferred_element_type=jnp.float32)               # (BT, E)

    # ---- Transformer blocks (statically unrolled) ---------------------------
    for layer in range(num_layers):
        slab = lnslab_ref[layer]                                  # (6, E)
        g1, be1 = slab[0:1, :], slab[1:2, :]
        bproj = slab[2:3, :]
        g2, be2 = slab[3:4, :], slab[4:5, :]
        b2 = slab[5:6, :]

        # LayerNorm 1 + fused QKV matmul
        xn = _layer_norm(x, g1, be1)
        qkv = jnp.dot(xn, wqkv_ref[layer],
                      preferred_element_type=jnp.float32)         # (BT, 3H)

        # Per-(head, batch) attention; no masks, no restacking concats.
        for h in range(num_heads):
            q_h = qkv[:, 0 * hdim + h * head_size:
                         0 * hdim + (h + 1) * head_size]          # (BT, hs)
            k_h = qkv[:, 1 * hdim + h * head_size:
                         1 * hdim + (h + 1) * head_size]
            v_h = qkv[:, 2 * hdim + h * head_size:
                         2 * hdim + (h + 1) * head_size]
            for b in range(B):
                q_bh = q_h[b * T:(b + 1) * T, :]                  # (T, hs)
                k_bh = k_h[b * T:(b + 1) * T, :]
                v_bh = v_h[b * T:(b + 1) * T, :]
                att = jax.lax.dot_general(
                    q_bh, k_bh, (((1,), (1,)), ((), ())),
                    preferred_element_type=jnp.float32) * scale   # (T, T)
                att = att - jnp.max(att, axis=-1, keepdims=True)
                p = jnp.exp(att)
                p = p * pl.reciprocal(
                    jnp.sum(p, axis=-1, keepdims=True), approx=True)
                # dropout on attention weights: identity (eval mode)
                out_bh = jnp.dot(p, v_bh,
                                 preferred_element_type=jnp.float32)  # (T, hs)
                attn_scr[pl.ds(b * T, T),
                         pl.ds(h * head_size, head_size)] = out_bh

        attn_cat = attn_scr[...]                                  # (BT, H)
        attn_out = jnp.dot(attn_cat, wproj_ref[layer],
                           preferred_element_type=jnp.float32) + bproj
        # dropout after proj: identity (eval mode)
        x = x + attn_out                                          # residual

        # LayerNorm 2 + FeedForward
        xn2 = _layer_norm(x, g2, be2)
        h1 = jnp.dot(xn2, w1_ref[layer],
                     preferred_element_type=jnp.float32) + b1_ref[layer]
        h1 = jnp.maximum(h1, 0.0)                                 # ReLU
        ff = jnp.dot(h1, w2_ref[layer],
                     preferred_element_type=jnp.float32) + b2
        x = x + ff                                                # residual

    # ---- Final LayerNorm + fc_out -------------------------------------------
    lnf = lnf_ref[...]                                            # (2, E)
    xn = _layer_norm(x, lnf[0:1, :], lnf[1:2, :])
    woutb = woutb_ref[...]                                        # (E+1, V)
    logits = jnp.dot(xn, woutb[0:embed, :],
                     preferred_element_type=jnp.float32) + woutb[embed:embed + 1, :]
    o_ref[...] = logits


# ---------------------------------------------------------------------------
# Wrapper: one pallas_call for the whole forward pass
# ---------------------------------------------------------------------------

def arithmetic_transformer_forward(tokens, params, num_heads, head_size,
                                   max_length):
    B, T = tokens.shape
    BT = B * T
    V = params["woutb"].shape[1]
    num_layers = params["wqkv"].shape[0]

    tok2d = tokens.reshape(BT, 1).astype(jnp.int32)

    inputs = [tok2d, params["table"], params["wqkv"], params["wproj"],
              params["w1"], params["w2"], params["lnslab"], params["b1"],
              params["lnf"], params["woutb"]]

    def full_spec(a):
        nd = a.ndim
        return pl.BlockSpec(a.shape, lambda i, _nd=nd: (0,) * _nd)

    kernel = functools.partial(_fused_forward_kernel,
                               num_layers=num_layers,
                               num_heads=num_heads,
                               head_size=head_size,
                               seq_len=T,
                               max_length=max_length)

    logits_flat = pl.pallas_call(
        kernel,
        out_shape=jax.ShapeDtypeStruct((BT, V), jnp.float32),
        grid_spec=pltpu.PrefetchScalarGridSpec(
            num_scalar_prefetch=0,
            grid=(1,),
            in_specs=[full_spec(a) for a in inputs],
            out_specs=pl.BlockSpec((BT, V), lambda i: (0, 0)),
            scratch_shapes=[
                pltpu.VMEM((BT, num_heads * head_size), jnp.float32)],
        ),
        compiler_params=pltpu.CompilerParams(
            dimension_semantics=("arbitrary",),
        ),
    )(*inputs)

    return logits_flat.reshape(B, T, V)


# ---------------------------------------------------------------------------
# Parameter construction (deterministic, synthetic, pre-packed)
# ---------------------------------------------------------------------------

def init_params(key, vocab_size, embed_size, num_heads, head_size,
                ff_dim, num_layers, max_length):
    H = num_heads * head_size
    keys = iter(jax.random.split(key, 16))

    def rnd(shape, scale=0.02):
        return scale * jax.random.normal(next(keys), shape, dtype=jnp.float32)

    # Combined embedding table: [token rows | positional rows] -> (V+ML, E)
    embed = rnd((vocab_size, embed_size), 1.0)       # nn.Embedding
    pos_embed = rnd((max_length, embed_size), 1.0)   # nn.Embedding
    table = jnp.concatenate([embed, pos_embed], axis=0)

    # Stacked per-layer weights (pre-transposed for x @ W layout).
    # wqkv columns: [Q heads | K heads | V heads], each block in head order.
    wqkv = rnd((num_layers, embed_size, 3 * H))
    wproj = rnd((num_layers, H, embed_size))
    w1 = rnd((num_layers, embed_size, ff_dim))
    w2 = rnd((num_layers, ff_dim, embed_size))

    # Packed LN/bias slab, row order: [ln1_g, ln1_b, bproj, ln2_g, ln2_b, b2]
    ones = jnp.ones((num_layers, 1, embed_size), jnp.float32)
    zeros = jnp.zeros((num_layers, 1, embed_size), jnp.float32)
    bproj = rnd((num_layers, 1, embed_size))
    b2 = rnd((num_layers, 1, embed_size))
    lnslab = jnp.concatenate([ones, zeros, bproj, ones, zeros, b2], axis=1)

    b1 = rnd((num_layers, 1, ff_dim))

    # Final LN packed (2, E): [gamma; beta]
    lnf = jnp.concatenate([jnp.ones((1, embed_size), jnp.float32),
                           jnp.zeros((1, embed_size), jnp.float32)], axis=0)

    # fc_out packed (E+1, V): [W (pre-transposed); bias row]
    wout = rnd((embed_size, vocab_size))
    bout = rnd((1, vocab_size))
    woutb = jnp.concatenate([wout, bout], axis=0)

    return {"table": table, "wqkv": wqkv, "wproj": wproj, "w1": w1, "w2": w2,
            "lnslab": lnslab, "b1": b1, "lnf": lnf, "woutb": woutb}


# ---------------------------------------------------------------------------
# main
# ---------------------------------------------------------------------------

if __name__ == "__main__":
    vocab_size = 14
    embed_size = 32
    num_heads = 2
    head_size = 16
    ff_dim = 64
    num_layers = 2
    max_length = 16
    batch = 2
    seq = 8

    key = jax.random.PRNGKey(0)
    pkey, dkey = jax.random.split(key)

    params = init_params(pkey, vocab_size, embed_size, num_heads, head_size,
                         ff_dim, num_layers, max_length)
    tokens = jax.random.randint(dkey, (batch, seq), 0, vocab_size,
                                dtype=jnp.int32)

    logits = arithmetic_transformer_forward(tokens, params, num_heads,
                                            head_size, max_length)
    logits = jax.block_until_ready(logits)

    assert logits.shape == (batch, seq, vocab_size)
    assert logits.dtype == jnp.float32
    assert bool(jnp.all(jnp.isfinite(logits)))
    print("KERNEL_OK")
</pallas_src>

<mosaic_0001>
module attributes {stable_mosaic.version = 11 : i64} {
  func.func @_fused_forward_kernel(%arg0: i32, %arg1: memref<16x1xi32, #tpu.memory_space<vmem>>, %arg2: memref<30x32xf32, #tpu.memory_space<vmem>>, %arg3: memref<2x32x96xf32, #tpu.memory_space<vmem>>, %arg4: memref<2x32x32xf32, #tpu.memory_space<vmem>>, %arg5: memref<2x32x64xf32, #tpu.memory_space<vmem>>, %arg6: memref<2x64x32xf32, #tpu.memory_space<vmem>>, %arg7: memref<2x6x32xf32, #tpu.memory_space<vmem>>, %arg8: memref<2x1x64xf32, #tpu.memory_space<vmem>>, %arg9: memref<2x32xf32, #tpu.memory_space<vmem>>, %arg10: memref<33x14xf32, #tpu.memory_space<vmem>>, %arg11: memref<16x14xf32, #tpu.memory_space<vmem>>, %arg12: memref<16x32xf32, #tpu.memory_space<vmem>>) attributes {dimension_semantics = [#tpu.dimension_semantics<arbitrary>], iteration_bounds = array<i64: 1>, scalar_prefetch = 0 : i64, scratch_operands = 1 : i64, tpu.core_type = #tpu.core_type<tc>, window_params = [{pipeline_mode = #tpu.pipeline_mode<synchronous>, transform_indices = @transform_0, window_bounds = array<i64: 16, 1>}, {pipeline_mode = #tpu.pipeline_mode<synchronous>, transform_indices = @transform_1, window_bounds = array<i64: 30, 32>}, {pipeline_mode = #tpu.pipeline_mode<synchronous>, transform_indices = @transform_2, window_bounds = array<i64: 2, 32, 96>}, {pipeline_mode = #tpu.pipeline_mode<synchronous>, transform_indices = @transform_3, window_bounds = array<i64: 2, 32, 32>}, {pipeline_mode = #tpu.pipeline_mode<synchronous>, transform_indices = @transform_4, window_bounds = array<i64: 2, 32, 64>}, {pipeline_mode = #tpu.pipeline_mode<synchronous>, transform_indices = @transform_5, window_bounds = array<i64: 2, 64, 32>}, {pipeline_mode = #tpu.pipeline_mode<synchronous>, transform_indices = @transform_6, window_bounds = array<i64: 2, 6, 32>}, {pipeline_mode = #tpu.pipeline_mode<synchronous>, transform_indices = @transform_7, window_bounds = array<i64: 2, 1, 64>}, {pipeline_mode = #tpu.pipeline_mode<synchronous>, transform_indices = @transform_8, window_bounds = array<i64: 2, 32>}, {pipeline_mode = #tpu.pipeline_mode<synchronous>, transform_indices = @transform_9, window_bounds = array<i64: 33, 14>}, {pipeline_mode = #tpu.pipeline_mode<synchronous>, transform_indices = @transform_10, window_bounds = array<i64: 16, 14>}]} {
    %0 = tpu.iota {dimensions = array<i32: 1>} : vector<16x30xi32>
    %1 = tpu.iota {dimensions = array<i32: 0>} : vector<16x30xi32>
    %c8_i32 = arith.constant 8 : i32
    %c0_i32 = arith.constant 0 : i32
    %2 = arith.cmpi eq, %c8_i32, %c0_i32 : i32
    %c1_i32 = arith.constant 1 : i32
    %3 = arith.select %2, %c1_i32, %c8_i32 : i32
    %4 = vector.broadcast %3 : i32 to vector<16x30xi32>
    %5 = arith.remsi %1, %4 : vector<16x30xi32>
    %c0_i32_0 = arith.constant 0 : i32
    %6 = vector.broadcast %c0_i32_0 : i32 to vector<16x30xi32>
    %7 = arith.cmpi ne, %5, %6 : vector<16x30xi32>
    %c0_i32_1 = arith.constant 0 : i32
    %8 = vector.broadcast %c0_i32_1 : i32 to vector<16x30xi32>
    %9 = arith.cmpi slt, %5, %8 : vector<16x30xi32>
    %c0_i32_2 = arith.constant 0 : i32
    %10 = arith.cmpi slt, %3, %c0_i32_2 : i32
    %11 = vector.broadcast %10 : i1 to vector<16x30xi1>
    %12 = vector.broadcast %11 : vector<16x30xi1> to vector<16x30xi1>
    %13 = arith.xori %9, %12 : vector<16x30xi1>
    %14 = arith.andi %13, %7 : vector<16x30xi1>
    %15 = vector.broadcast %3 : i32 to vector<16x30xi32>
    %16 = arith.addi %5, %15 : vector<16x30xi32>
    %17 = arith.select %14, %16, %5 : vector<16x30xi1>, vector<16x30xi32>
    %c15_i32 = arith.constant 15 : i32
    %18 = vector.broadcast %c15_i32 : i32 to vector<16x30xi32>
    %19 = arith.minsi %17, %18 : vector<16x30xi32>
    %c14_i32 = arith.constant 14 : i32
    %20 = vector.broadcast %c14_i32 : i32 to vector<16x30xi32>
    %21 = arith.addi %20, %19 : vector<16x30xi32>
    %c0 = arith.constant 0 : index
    %c0_3 = arith.constant 0 : index
    %22 = vector.load %arg1[%c0, %c0_3] : memref<16x1xi32, #tpu.memory_space<vmem>>, vector<16x1xi32>
    %23 = vector.broadcast %22 : vector<16x1xi32> to vector<16x30xi32>
    %24 = arith.cmpi eq, %0, %23 : vector<16x30xi32>
    %25 = arith.cmpi eq, %0, %21 : vector<16x30xi32>
    %26 = arith.ori %24, %25 : vector<16x30xi1>
    %cst = arith.constant 1.000000e+00 : f32
    %cst_4 = arith.constant 0.000000e+00 : f32
    %27 = vector.broadcast %cst : f32 to vector<16x30xf32>
    %28 = vector.broadcast %cst_4 : f32 to vector<16x30xf32>
    %29 = arith.select %26, %27, %28 : vector<16x30xi1>, vector<16x30xf32>
    %c0_5 = arith.constant 0 : index
    %c0_6 = arith.constant 0 : index
    %30 = vector.load %arg2[%c0_5, %c0_6] : memref<30x32xf32, #tpu.memory_space<vmem>>, vector<30x32xf32>
    %cst_7 = arith.constant dense<0.000000e+00> : vector<16x32xf32>
    %31 = tpu.matmul %29, %30, %cst_7 {dimension_numbers = #tpu.dot_dimension_numbers<[1], [0], [0], [1], [0, 0, 1, 1], [], []>} : vector<16x30xf32>, vector<30x32xf32>, vector<16x32xf32> -> vector<16x32xf32>
    %c0_8 = arith.constant 0 : index
    %c0_9 = arith.constant 0 : index
    %c0_10 = arith.constant 0 : index
    %32 = vector.load %arg7[%c0_8, %c0_9, %c0_10] : memref<2x6x32xf32, #tpu.memory_space<vmem>>, vector<1x6x32xf32>
    %33 = vector.shape_cast %32 : vector<1x6x32xf32> to vector<6x32xf32>
    %34 = vector.extract_strided_slice %33 {offsets = [0, 0], sizes = [1, 32], strides = [1, 1]} : vector<6x32xf32> to vector<1x32xf32>
    %35 = vector.extract_strided_slice %33 {offsets = [1, 0], sizes = [1, 32], strides = [1, 1]} : vector<6x32xf32> to vector<1x32xf32>
    %36 = vector.extract_strided_slice %33 {offsets = [2, 0], sizes = [1, 32], strides = [1, 1]} : vector<6x32xf32> to vector<1x32xf32>
    %37 = vector.extract_strided_slice %33 {offsets = [3, 0], sizes = [1, 32], strides = [1, 1]} : vector<6x32xf32> to vector<1x32xf32>
    %38 = vector.extract_strided_slice %33 {offsets = [4, 0], sizes = [1, 32], strides = [1, 1]} : vector<6x32xf32> to vector<1x32xf32>
    %39 = vector.extract_strided_slice %33 {offsets = [5, 0], sizes = [1, 32], strides = [1, 1]} : vector<6x32xf32> to vector<1x32xf32>
    %cst_11 = arith.constant dense<0.000000e+00> : vector<16xf32>
    %40 = vector.multi_reduction <add>, %31, %cst_11 [1] : vector<16x32xf32> to vector<16xf32>
    %41 = vector.shape_cast %40 : vector<16xf32> to vector<16x1xf32>
    %cst_12 = arith.constant 3.200000e+01 : f32
    %42 = vector.broadcast %cst_12 : f32 to vector<16x1xf32>
    %43 = arith.divf %41, %42 : vector<16x1xf32>
    %44 = vector.broadcast %43 : vector<16x1xf32> to vector<16x32xf32>
    %45 = arith.subf %31, %44 : vector<16x32xf32>
    %46 = vector.broadcast %43 : vector<16x1xf32> to vector<16x32xf32>
    %47 = arith.subf %31, %46 : vector<16x32xf32>
    %48 = arith.mulf %45, %47 : vector<16x32xf32>
    %cst_13 = arith.constant dense<0.000000e+00> : vector<16xf32>
    %49 = vector.multi_reduction <add>, %48, %cst_13 [1] : vector<16x32xf32> to vector<16xf32>
    %50 = vector.shape_cast %49 : vector<16xf32> to vector<16x1xf32>
    %cst_14 = arith.constant 3.200000e+01 : f32
    %51 = vector.broadcast %cst_14 : f32 to vector<16x1xf32>
    %52 = arith.divf %50, %51 : vector<16x1xf32>
    %53 = vector.broadcast %43 : vector<16x1xf32> to vector<16x32xf32>
    %54 = arith.subf %31, %53 : vector<16x32xf32>
    %cst_15 = arith.constant 9.99999974E-6 : f32
    %55 = vector.broadcast %cst_15 : f32 to vector<16x1xf32>
    %56 = arith.addf %52, %55 : vector<16x1xf32>
    %57 = math.rsqrt %56 : vector<16x1xf32>
    %58 = vector.broadcast %57 : vector<16x1xf32> to vector<16x32xf32>
    %59 = arith.mulf %54, %58 : vector<16x32xf32>
    %60 = vector.broadcast %34 : vector<1x32xf32> to vector<16x32xf32>
    %61 = arith.mulf %59, %60 : vector<16x32xf32>
    %62 = vector.broadcast %35 : vector<1x32xf32> to vector<16x32xf32>
    %63 = arith.addf %61, %62 : vector<16x32xf32>
    %c0_16 = arith.constant 0 : index
    %c0_17 = arith.constant 0 : index
    %c0_18 = arith.constant 0 : index
    %64 = vector.load %arg3[%c0_16, %c0_17, %c0_18] : memref<2x32x96xf32, #tpu.memory_space<vmem>>, vector<1x32x96xf32>
    %65 = vector.shape_cast %64 : vector<1x32x96xf32> to vector<32x96xf32>
    %cst_19 = arith.constant dense<0.000000e+00> : vector<16x96xf32>
    %66 = tpu.matmul %63, %65, %cst_19 {dimension_numbers = #tpu.dot_dimension_numbers<[1], [0], [0], [1], [0, 0, 1, 1], [], []>} : vector<16x32xf32>, vector<32x96xf32>, vector<16x96xf32> -> vector<16x96xf32>
    %67 = vector.extract_strided_slice %66 {offsets = [0, 0], sizes = [16, 16], strides = [1, 1]} : vector<16x96xf32> to vector<16x16xf32>
    %68 = vector.extract_strided_slice %66 {offsets = [0, 32], sizes = [16, 16], strides = [1, 1]} : vector<16x96xf32> to vector<16x16xf32>
    %69 = vector.extract_strided_slice %66 {offsets = [0, 64], sizes = [16, 16], strides = [1, 1]} : vector<16x96xf32> to vector<16x16xf32>
    %70 = vector.extract_strided_slice %67 {offsets = [0, 0], sizes = [8, 16], strides = [1, 1]} : vector<16x16xf32> to vector<8x16xf32>
    %71 = vector.extract_strided_slice %68 {offsets = [0, 0], sizes = [8, 16], strides = [1, 1]} : vector<16x16xf32> to vector<8x16xf32>
    %72 = vector.extract_strided_slice %69 {offsets = [0, 0], sizes = [8, 16], strides = [1, 1]} : vector<16x16xf32> to vector<8x16xf32>
    %cst_20 = arith.constant dense<0.000000e+00> : vector<8x8xf32>
    %73 = tpu.matmul %70, %71, %cst_20 {dimension_numbers = #tpu.dot_dimension_numbers<[1], [1], [0], [0], [0, 0, 1, 0], [], []>} : vector<8x16xf32>, vector<8x16xf32>, vector<8x8xf32> -> vector<8x8xf32>
    %cst_21 = arith.constant 2.500000e-01 : f32
    %74 = vector.broadcast %cst_21 : f32 to vector<8x8xf32>
    %75 = arith.mulf %73, %74 : vector<8x8xf32>
    %cst_22 = arith.constant dense<0xFF800000> : vector<8xf32>
    %76 = vector.multi_reduction <maximumf>, %75, %cst_22 [1] : vector<8x8xf32> to vector<8xf32>
    %77 = vector.shape_cast %76 : vector<8xf32> to vector<8x1xf32>
    %78 = vector.broadcast %77 : vector<8x1xf32> to vector<8x8xf32>
    %79 = arith.subf %75, %78 : vector<8x8xf32>
    %80 = math.exp %79 : vector<8x8xf32>
    %cst_23 = arith.constant dense<0.000000e+00> : vector<8xf32>
    %81 = vector.multi_reduction <add>, %80, %cst_23 [1] : vector<8x8xf32> to vector<8xf32>
    %82 = vector.shape_cast %81 : vector<8xf32> to vector<8x1xf32>
    %83 = tpu.reciprocal %82 {approx = true} : vector<8x1xf32> -> vector<8x1xf32>
    %84 = vector.broadcast %83 : vector<8x1xf32> to vector<8x8xf32>
    %85 = arith.mulf %80, %84 : vector<8x8xf32>
    %cst_24 = arith.constant dense<0.000000e+00> : vector<8x16xf32>
    %86 = tpu.matmul %85, %72, %cst_24 {dimension_numbers = #tpu.dot_dimension_numbers<[1], [0], [0], [1], [0, 0, 1, 1], [], []>} : vector<8x8xf32>, vector<8x16xf32>, vector<8x16xf32> -> vector<8x16xf32>
    %c0_25 = arith.constant 0 : index
    %c0_26 = arith.constant 0 : index
    %87 = vector.load %arg12[%c0_25, %c0_26] : memref<16x32xf32, #tpu.memory_space<vmem>>, vector<8x16xf32>
    tpu.vector_store %arg12[%c0_25, %c0_26], %86 {strides = array<i32>} : memref<16x32xf32, #tpu.memory_space<vmem>>, vector<8x16xf32>,
    %88 = vector.extract_strided_slice %67 {offsets = [8, 0], sizes = [8, 16], strides = [1, 1]} : vector<16x16xf32> to vector<8x16xf32>
    %89 = vector.extract_strided_slice %68 {offsets = [8, 0], sizes = [8, 16], strides = [1, 1]} : vector<16x16xf32> to vector<8x16xf32>
    %90 = vector.extract_strided_slice %69 {offsets = [8, 0], sizes = [8, 16], strides = [1, 1]} : vector<16x16xf32> to vector<8x16xf32>
    %cst_27 = arith.constant dense<0.000000e+00> : vector<8x8xf32>
    %91 = tpu.matmul %88, %89, %cst_27 {dimension_numbers = #tpu.dot_dimension_numbers<[1], [1], [0], [0], [0, 0, 1, 0], [], []>} : vector<8x16xf32>, vector<8x16xf32>, vector<8x8xf32> -> vector<8x8xf32>
    %cst_28 = arith.constant 2.500000e-01 : f32
    %92 = vector.broadcast %cst_28 : f32 to vector<8x8xf32>
    %93 = arith.mulf %91, %92 : vector<8x8xf32>
    %cst_29 = arith.constant dense<0xFF800000> : vector<8xf32>
    %94 = vector.multi_reduction <maximumf>, %93, %cst_29 [1] : vector<8x8xf32> to vector<8xf32>
    %95 = vector.shape_cast %94 : vector<8xf32> to vector<8x1xf32>
    %96 = vector.broadcast %95 : vector<8x1xf32> to vector<8x8xf32>
    %97 = arith.subf %93, %96 : vector<8x8xf32>
    %98 = math.exp %97 : vector<8x8xf32>
    %cst_30 = arith.constant dense<0.000000e+00> : vector<8xf32>
    %99 = vector.multi_reduction <add>, %98, %cst_30 [1] : vector<8x8xf32> to vector<8xf32>
    %100 = vector.shape_cast %99 : vector<8xf32> to vector<8x1xf32>
    %101 = tpu.reciprocal %100 {approx = true} : vector<8x1xf32> -> vector<8x1xf32>
    %102 = vector.broadcast %101 : vector<8x1xf32> to vector<8x8xf32>
    %103 = arith.mulf %98, %102 : vector<8x8xf32>
    %cst_31 = arith.constant dense<0.000000e+00> : vector<8x16xf32>
    %104 = tpu.matmul %103, %90, %cst_31 {dimension_numbers = #tpu.dot_dimension_numbers<[1], [0], [0], [1], [0, 0, 1, 1], [], []>} : vector<8x8xf32>, vector<8x16xf32>, vector<8x16xf32> -> vector<8x16xf32>
    %c8 = arith.constant 8 : index
    %c0_32 = arith.constant 0 : index
    %105 = vector.load %arg12[%c8, %c0_32] : memref<16x32xf32, #tpu.memory_space<vmem>>, vector<8x16xf32>
    tpu.vector_store %arg12[%c8, %c0_32], %104 {strides = array<i32>} : memref<16x32xf32, #tpu.memory_space<vmem>>, vector<8x16xf32>,
    %106 = vector.extract_strided_slice %66 {offsets = [0, 16], sizes = [16, 16], strides = [1, 1]} : vector<16x96xf32> to vector<16x16xf32>
    %107 = vector.extract_strided_slice %66 {offsets = [0, 48], sizes = [16, 16], strides = [1, 1]} : vector<16x96xf32> to vector<16x16xf32>
    %108 = vector.extract_strided_slice %66 {offsets = [0, 80], sizes = [16, 16], strides = [1, 1]} : vector<16x96xf32> to vector<16x16xf32>
    %109 = vector.extract_strided_slice %106 {offsets = [0, 0], sizes = [8, 16], strides = [1, 1]} : vector<16x16xf32> to vector<8x16xf32>
    %110 = vector.extract_strided_slice %107 {offsets = [0, 0], sizes = [8, 16], strides = [1, 1]} : vector<16x16xf32> to vector<8x16xf32>
    %111 = vector.extract_strided_slice %108 {offsets = [0, 0], sizes = [8, 16], strides = [1, 1]} : vector<16x16xf32> to vector<8x16xf32>
    %cst_33 = arith.constant dense<0.000000e+00> : vector<8x8xf32>
    %112 = tpu.matmul %109, %110, %cst_33 {dimension_numbers = #tpu.dot_dimension_numbers<[1], [1], [0], [0], [0, 0, 1, 0], [], []>} : vector<8x16xf32>, vector<8x16xf32>, vector<8x8xf32> -> vector<8x8xf32>
    %cst_34 = arith.constant 2.500000e-01 : f32
    %113 = vector.broadcast %cst_34 : f32 to vector<8x8xf32>
    %114 = arith.mulf %112, %113 : vector<8x8xf32>
    %cst_35 = arith.constant dense<0xFF800000> : vector<8xf32>
    %115 = vector.multi_reduction <maximumf>, %114, %cst_35 [1] : vector<8x8xf32> to vector<8xf32>
    %116 = vector.shape_cast %115 : vector<8xf32> to vector<8x1xf32>
    %117 = vector.broadcast %116 : vector<8x1xf32> to vector<8x8xf32>
    %118 = arith.subf %114, %117 : vector<8x8xf32>
    %119 = math.exp %118 : vector<8x8xf32>
    %cst_36 = arith.constant dense<0.000000e+00> : vector<8xf32>
    %120 = vector.multi_reduction <add>, %119, %cst_36 [1] : vector<8x8xf32> to vector<8xf32>
    %121 = vector.shape_cast %120 : vector<8xf32> to vector<8x1xf32>
    %122 = tpu.reciprocal %121 {approx = true} : vector<8x1xf32> -> vector<8x1xf32>
    %123 = vector.broadcast %122 : vector<8x1xf32> to vector<8x8xf32>
    %124 = arith.mulf %119, %123 : vector<8x8xf32>
    %cst_37 = arith.constant dense<0.000000e+00> : vector<8x16xf32>
    %125 = tpu.matmul %124, %111, %cst_37 {dimension_numbers = #tpu.dot_dimension_numbers<[1], [0], [0], [1], [0, 0, 1, 1], [], []>} : vector<8x8xf32>, vector<8x16xf32>, vector<8x16xf32> -> vector<8x16xf32>
    %c0_38 = arith.constant 0 : index
    %c16 = arith.constant 16 : index
    %126 = vector.load %arg12[%c0_38, %c16] : memref<16x32xf32, #tpu.memory_space<vmem>>, vector<8x16xf32>
    tpu.vector_store %arg12[%c0_38, %c16], %125 {strides = array<i32>} : memref<16x32xf32, #tpu.memory_space<vmem>>, vector<8x16xf32>,
    %127 = vector.extract_strided_slice %106 {offsets = [8, 0], sizes = [8, 16], strides = [1, 1]} : vector<16x16xf32> to vector<8x16xf32>
    %128 = vector.extract_strided_slice %107 {offsets = [8, 0], sizes = [8, 16], strides = [1, 1]} : vector<16x16xf32> to vector<8x16xf32>
    %129 = vector.extract_strided_slice %108 {offsets = [8, 0], sizes = [8, 16], strides = [1, 1]} : vector<16x16xf32> to vector<8x16xf32>
    %cst_39 = arith.constant dense<0.000000e+00> : vector<8x8xf32>
    %130 = tpu.matmul %127, %128, %cst_39 {dimension_numbers = #tpu.dot_dimension_numbers<[1], [1], [0], [0], [0, 0, 1, 0], [], []>} : vector<8x16xf32>, vector<8x16xf32>, vector<8x8xf32> -> vector<8x8xf32>
    %cst_40 = arith.constant 2.500000e-01 : f32
    %131 = vector.broadcast %cst_40 : f32 to vector<8x8xf32>
    %132 = arith.mulf %130, %131 : vector<8x8xf32>
    %cst_41 = arith.constant dense<0xFF800000> : vector<8xf32>
    %133 = vector.multi_reduction <maximumf>, %132, %cst_41 [1] : vector<8x8xf32> to vector<8xf32>
    %134 = vector.shape_cast %133 : vector<8xf32> to vector<8x1xf32>
    %135 = vector.broadcast %134 : vector<8x1xf32> to vector<8x8xf32>
    %136 = arith.subf %132, %135 : vector<8x8xf32>
    %137 = math.exp %136 : vector<8x8xf32>
    %cst_42 = arith.constant dense<0.000000e+00> : vector<8xf32>
    %138 = vector.multi_reduction <add>, %137, %cst_42 [1] : vector<8x8xf32> to vector<8xf32>
    %139 = vector.shape_cast %138 : vector<8xf32> to vector<8x1xf32>
    %140 = tpu.reciprocal %139 {approx = true} : vector<8x1xf32> -> vector<8x1xf32>
    %141 = vector.broadcast %140 : vector<8x1xf32> to vector<8x8xf32>
    %142 = arith.mulf %137, %141 : vector<8x8xf32>
    %cst_43 = arith.constant dense<0.000000e+00> : vector<8x16xf32>
    %143 = tpu.matmul %142, %129, %cst_43 {dimension_numbers = #tpu.dot_dimension_numbers<[1], [0], [0], [1], [0, 0, 1, 1], [], []>} : vector<8x8xf32>, vector<8x16xf32>, vector<8x16xf32> -> vector<8x16xf32>
    %c8_44 = arith.constant 8 : index
    %c16_45 = arith.constant 16 : index
    %144 = vector.load %arg12[%c8_44, %c16_45] : memref<16x32xf32, #tpu.memory_space<vmem>>, vector<8x16xf32>
    tpu.vector_store %arg12[%c8_44, %c16_45], %143 {strides = array<i32>} : memref<16x32xf32, #tpu.memory_space<vmem>>, vector<8x16xf32>,
    %c0_46 = arith.constant 0 : index
    %c0_47 = arith.constant 0 : index
    %145 = vector.load %arg12[%c0_46, %c0_47] : memref<16x32xf32, #tpu.memory_space<vmem>>, vector<16x32xf32>
    %c0_48 = arith.constant 0 : index
    %c0_49 = arith.constant 0 : index
    %c0_50 = arith.constant 0 : index
    %146 = vector.load %arg4[%c0_48, %c0_49, %c0_50] : memref<2x32x32xf32, #tpu.memory_space<vmem>>, vector<1x32x32xf32>
    %147 = vector.shape_cast %146 : vector<1x32x32xf32> to vector<32x32xf32>
    %cst_51 = arith.constant dense<0.000000e+00> : vector<16x32xf32>
    %148 = tpu.matmul %145, %147, %cst_51 {dimension_numbers = #tpu.dot_dimension_numbers<[1], [0], [0], [1], [0, 0, 1, 1], [], []>} : vector<16x32xf32>, vector<32x32xf32>, vector<16x32xf32> -> vector<16x32xf32>
    %149 = vector.broadcast %36 : vector<1x32xf32> to vector<16x32xf32>
    %150 = arith.addf %148, %149 : vector<16x32xf32>
    %151 = arith.addf %31, %150 : vector<16x32xf32>
    %cst_52 = arith.constant dense<0.000000e+00> : vector<16xf32>
    %152 = vector.multi_reduction <add>, %151, %cst_52 [1] : vector<16x32xf32> to vector<16xf32>
    %153 = vector.shape_cast %152 : vector<16xf32> to vector<16x1xf32>
    %cst_53 = arith.constant 3.200000e+01 : f32
    %154 = vector.broadcast %cst_53 : f32 to vector<16x1xf32>
    %155 = arith.divf %153, %154 : vector<16x1xf32>
    %156 = vector.broadcast %155 : vector<16x1xf32> to vector<16x32xf32>
    %157 = arith.subf %151, %156 : vector<16x32xf32>
    %158 = vector.broadcast %155 : vector<16x1xf32> to vector<16x32xf32>
    %159 = arith.subf %151, %158 : vector<16x32xf32>
    %160 = arith.mulf %157, %159 : vector<16x32xf32>
    %cst_54 = arith.constant dense<0.000000e+00> : vector<16xf32>
    %161 = vector.multi_reduction <add>, %160, %cst_54 [1] : vector<16x32xf32> to vector<16xf32>
    %162 = vector.shape_cast %161 : vector<16xf32> to vector<16x1xf32>
    %cst_55 = arith.constant 3.200000e+01 : f32
    %163 = vector.broadcast %cst_55 : f32 to vector<16x1xf32>
    %164 = arith.divf %162, %163 : vector<16x1xf32>
    %165 = vector.broadcast %155 : vector<16x1xf32> to vector<16x32xf32>
    %166 = arith.subf %151, %165 : vector<16x32xf32>
    %cst_56 = arith.constant 9.99999974E-6 : f32
    %167 = vector.broadcast %cst_56 : f32 to vector<16x1xf32>
    %168 = arith.addf %164, %167 : vector<16x1xf32>
    %169 = math.rsqrt %168 : vector<16x1xf32>
    %170 = vector.broadcast %169 : vector<16x1xf32> to vector<16x32xf32>
    %171 = arith.mulf %166, %170 : vector<16x32xf32>
    %172 = vector.broadcast %37 : vector<1x32xf32> to vector<16x32xf32>
    %173 = arith.mulf %171, %172 : vector<16x32xf32>
    %174 = vector.broadcast %38 : vector<1x32xf32> to vector<16x32xf32>
    %175 = arith.addf %173, %174 : vector<16x32xf32>
    %c0_57 = arith.constant 0 : index
    %c0_58 = arith.constant 0 : index
    %c0_59 = arith.constant 0 : index
    %176 = vector.load %arg5[%c0_57, %c0_58, %c0_59] : memref<2x32x64xf32, #tpu.memory_space<vmem>>, vector<1x32x64xf32>
    %177 = vector.shape_cast %176 : vector<1x32x64xf32> to vector<32x64xf32>
    %cst_60 = arith.constant dense<0.000000e+00> : vector<16x64xf32>
    %178 = tpu.matmul %175, %177, %cst_60 {dimension_numbers = #tpu.dot_dimension_numbers<[1], [0], [0], [1], [0, 0, 1, 1], [], []>} : vector<16x32xf32>, vector<32x64xf32>, vector<16x64xf32> -> vector<16x64xf32>
    %c0_61 = arith.constant 0 : index
    %c0_62 = arith.constant 0 : index
    %c0_63 = arith.constant 0 : index
    %179 = vector.load %arg8[%c0_61, %c0_62, %c0_63] : memref<2x1x64xf32, #tpu.memory_space<vmem>>, vector<1x1x64xf32>
    %180 = vector.shape_cast %179 : vector<1x1x64xf32> to vector<1x64xf32>
    %181 = vector.broadcast %180 : vector<1x64xf32> to vector<16x64xf32>
    %182 = arith.addf %178, %181 : vector<16x64xf32>
    %cst_64 = arith.constant 0.000000e+00 : f32
    %183 = vector.broadcast %cst_64 : f32 to vector<16x64xf32>
    %184 = arith.maximumf %182, %183 : vector<16x64xf32>
    %c0_65 = arith.constant 0 : index
    %c0_66 = arith.constant 0 : index
    %c0_67 = arith.constant 0 : index
    %185 = vector.load %arg6[%c0_65, %c0_66, %c0_67] : memref<2x64x32xf32, #tpu.memory_space<vmem>>, vector<1x64x32xf32>
    %186 = vector.shape_cast %185 : vector<1x64x32xf32> to vector<64x32xf32>
    %cst_68 = arith.constant dense<0.000000e+00> : vector<16x32xf32>
    %187 = tpu.matmul %184, %186, %cst_68 {dimension_numbers = #tpu.dot_dimension_numbers<[1], [0], [0], [1], [0, 0, 1, 1], [], []>} : vector<16x64xf32>, vector<64x32xf32>, vector<16x32xf32> -> vector<16x32xf32>
    %188 = vector.broadcast %39 : vector<1x32xf32> to vector<16x32xf32>
    %189 = arith.addf %187, %188 : vector<16x32xf32>
    %190 = arith.addf %151, %189 : vector<16x32xf32>
    %c1 = arith.constant 1 : index
    %c0_69 = arith.constant 0 : index
    %c0_70 = arith.constant 0 : index
    %191 = vector.load %arg7[%c1, %c0_69, %c0_70] : memref<2x6x32xf32, #tpu.memory_space<vmem>>, vector<1x6x32xf32>
    %192 = vector.shape_cast %191 : vector<1x6x32xf32> to vector<6x32xf32>
    %193 = vector.extract_strided_slice %192 {offsets = [0, 0], sizes = [1, 32], strides = [1, 1]} : vector<6x32xf32> to vector<1x32xf32>
    %194 = vector.extract_strided_slice %192 {offsets = [1, 0], sizes = [1, 32], strides = [1, 1]} : vector<6x32xf32> to vector<1x32xf32>
    %195 = vector.extract_strided_slice %192 {offsets = [2, 0], sizes = [1, 32], strides = [1, 1]} : vector<6x32xf32> to vector<1x32xf32>
    %196 = vector.extract_strided_slice %192 {offsets = [3, 0], sizes = [1, 32], strides = [1, 1]} : vector<6x32xf32> to vector<1x32xf32>
    %197 = vector.extract_strided_slice %192 {offsets = [4, 0], sizes = [1, 32], strides = [1, 1]} : vector<6x32xf32> to vector<1x32xf32>
    %198 = vector.extract_strided_slice %192 {offsets = [5, 0], sizes = [1, 32], strides = [1, 1]} : vector<6x32xf32> to vector<1x32xf32>
    %cst_71 = arith.constant dense<0.000000e+00> : vector<16xf32>
    %199 = vector.multi_reduction <add>, %190, %cst_71 [1] : vector<16x32xf32> to vector<16xf32>
    %200 = vector.shape_cast %199 : vector<16xf32> to vector<16x1xf32>
    %cst_72 = arith.constant 3.200000e+01 : f32
    %201 = vector.broadcast %cst_72 : f32 to vector<16x1xf32>
    %202 = arith.divf %200, %201 : vector<16x1xf32>
    %203 = vector.broadcast %202 : vector<16x1xf32> to vector<16x32xf32>
    %204 = arith.subf %190, %203 : vector<16x32xf32>
    %205 = vector.broadcast %202 : vector<16x1xf32> to vector<16x32xf32>
    %206 = arith.subf %190, %205 : vector<16x32xf32>
    %207 = arith.mulf %204, %206 : vector<16x32xf32>
    %cst_73 = arith.constant dense<0.000000e+00> : vector<16xf32>
    %208 = vector.multi_reduction <add>, %207, %cst_73 [1] : vector<16x32xf32> to vector<16xf32>
    %209 = vector.shape_cast %208 : vector<16xf32> to vector<16x1xf32>
    %cst_74 = arith.constant 3.200000e+01 : f32
    %210 = vector.broadcast %cst_74 : f32 to vector<16x1xf32>
    %211 = arith.divf %209, %210 : vector<16x1xf32>
    %212 = vector.broadcast %202 : vector<16x1xf32> to vector<16x32xf32>
    %213 = arith.subf %190, %212 : vector<16x32xf32>
    %cst_75 = arith.constant 9.99999974E-6 : f32
    %214 = vector.broadcast %cst_75 : f32 to vector<16x1xf32>
    %215 = arith.addf %211, %214 : vector<16x1xf32>
    %216 = math.rsqrt %215 : vector<16x1xf32>
    %217 = vector.broadcast %216 : vector<16x1xf32> to vector<16x32xf32>
    %218 = arith.mulf %213, %217 : vector<16x32xf32>
    %219 = vector.broadcast %193 : vector<1x32xf32> to vector<16x32xf32>
    %220 = arith.mulf %218, %219 : vector<16x32xf32>
    %221 = vector.broadcast %194 : vector<1x32xf32> to vector<16x32xf32>
    %222 = arith.addf %220, %221 : vector<16x32xf32>
    %c1_76 = arith.constant 1 : index
    %c0_77 = arith.constant 0 : index
    %c0_78 = arith.constant 0 : index
    %223 = vector.load %arg3[%c1_76, %c0_77, %c0_78] : memref<2x32x96xf32, #tpu.memory_space<vmem>>, vector<1x32x96xf32>
    %224 = vector.shape_cast %223 : vector<1x32x96xf32> to vector<32x96xf32>
    %cst_79 = arith.constant dense<0.000000e+00> : vector<16x96xf32>
    %225 = tpu.matmul %222, %224, %cst_79 {dimension_numbers = #tpu.dot_dimension_numbers<[1], [0], [0], [1], [0, 0, 1, 1], [], []>} : vector<16x32xf32>, vector<32x96xf32>, vector<16x96xf32> -> vector<16x96xf32>
    %226 = vector.extract_strided_slice %225 {offsets = [0, 0], sizes = [16, 16], strides = [1, 1]} : vector<16x96xf32> to vector<16x16xf32>
    %227 = vector.extract_strided_slice %225 {offsets = [0, 32], sizes = [16, 16], strides = [1, 1]} : vector<16x96xf32> to vector<16x16xf32>
    %228 = vector.extract_strided_slice %225 {offsets = [0, 64], sizes = [16, 16], strides = [1, 1]} : vector<16x96xf32> to vector<16x16xf32>
    %229 = vector.extract_strided_slice %226 {offsets = [0, 0], sizes = [8, 16], strides = [1, 1]} : vector<16x16xf32> to vector<8x16xf32>
    %230 = vector.extract_strided_slice %227 {offsets = [0, 0], sizes = [8, 16], strides = [1, 1]} : vector<16x16xf32> to vector<8x16xf32>
    %231 = vector.extract_strided_slice %228 {offsets = [0, 0], sizes = [8, 16], strides = [1, 1]} : vector<16x16xf32> to vector<8x16xf32>
    %cst_80 = arith.constant dense<0.000000e+00> : vector<8x8xf32>
    %232 = tpu.matmul %229, %230, %cst_80 {dimension_numbers = #tpu.dot_dimension_numbers<[1], [1], [0], [0], [0, 0, 1, 0], [], []>} : vector<8x16xf32>, vector<8x16xf32>, vector<8x8xf32> -> vector<8x8xf32>
    %cst_81 = arith.constant 2.500000e-01 : f32
    %233 = vector.broadcast %cst_81 : f32 to vector<8x8xf32>
    %234 = arith.mulf %232, %233 : vector<8x8xf32>
    %cst_82 = arith.constant dense<0xFF800000> : vector<8xf32>
    %235 = vector.multi_reduction <maximumf>, %234, %cst_82 [1] : vector<8x8xf32> to vector<8xf32>
    %236 = vector.shape_cast %235 : vector<8xf32> to vector<8x1xf32>
    %237 = vector.broadcast %236 : vector<8x1xf32> to vector<8x8xf32>
    %238 = arith.subf %234, %237 : vector<8x8xf32>
    %239 = math.exp %238 : vector<8x8xf32>
    %cst_83 = arith.constant dense<0.000000e+00> : vector<8xf32>
    %240 = vector.multi_reduction <add>, %239, %cst_83 [1] : vector<8x8xf32> to vector<8xf32>
    %241 = vector.shape_cast %240 : vector<8xf32> to vector<8x1xf32>
    %242 = tpu.reciprocal %241 {approx = true} : vector<8x1xf32> -> vector<8x1xf32>
    %243 = vector.broadcast %242 : vector<8x1xf32> to vector<8x8xf32>
    %244 = arith.mulf %239, %243 : vector<8x8xf32>
    %cst_84 = arith.constant dense<0.000000e+00> : vector<8x16xf32>
    %245 = tpu.matmul %244, %231, %cst_84 {dimension_numbers = #tpu.dot_dimension_numbers<[1], [0], [0], [1], [0, 0, 1, 1], [], []>} : vector<8x8xf32>, vector<8x16xf32>, vector<8x16xf32> -> vector<8x16xf32>
    %c0_85 = arith.constant 0 : index
    %c0_86 = arith.constant 0 : index
    %246 = vector.load %arg12[%c0_85, %c0_86] : memref<16x32xf32, #tpu.memory_space<vmem>>, vector<8x16xf32>
    tpu.vector_store %arg12[%c0_85, %c0_86], %245 {strides = array<i32>} : memref<16x32xf32, #tpu.memory_space<vmem>>, vector<8x16xf32>,
    %247 = vector.extract_strided_slice %226 {offsets = [8, 0], sizes = [8, 16], strides = [1, 1]} : vector<16x16xf32> to vector<8x16xf32>
    %248 = vector.extract_strided_slice %227 {offsets = [8, 0], sizes = [8, 16], strides = [1, 1]} : vector<16x16xf32> to vector<8x16xf32>
    %249 = vector.extract_strided_slice %228 {offsets = [8, 0], sizes = [8, 16], strides = [1, 1]} : vector<16x16xf32> to vector<8x16xf32>
    %cst_87 = arith.constant dense<0.000000e+00> : vector<8x8xf32>
    %250 = tpu.matmul %247, %248, %cst_87 {dimension_numbers = #tpu.dot_dimension_numbers<[1], [1], [0], [0], [0, 0, 1, 0], [], []>} : vector<8x16xf32>, vector<8x16xf32>, vector<8x8xf32> -> vector<8x8xf32>
    %cst_88 = arith.constant 2.500000e-01 : f32
    %251 = vector.broadcast %cst_88 : f32 to vector<8x8xf32>
    %252 = arith.mulf %250, %251 : vector<8x8xf32>
    %cst_89 = arith.constant dense<0xFF800000> : vector<8xf32>
    %253 = vector.multi_reduction <maximumf>, %252, %cst_89 [1] : vector<8x8xf32> to vector<8xf32>
    %254 = vector.shape_cast %253 : vector<8xf32> to vector<8x1xf32>
    %255 = vector.broadcast %254 : vector<8x1xf32> to vector<8x8xf32>
    %256 = arith.subf %252, %255 : vector<8x8xf32>
    %257 = math.exp %256 : vector<8x8xf32>
    %cst_90 = arith.constant dense<0.000000e+00> : vector<8xf32>
    %258 = vector.multi_reduction <add>, %257, %cst_90 [1] : vector<8x8xf32> to vector<8xf32>
    %259 = vector.shape_cast %258 : vector<8xf32> to vector<8x1xf32>
    %260 = tpu.reciprocal %259 {approx = true} : vector<8x1xf32> -> vector<8x1xf32>
    %261 = vector.broadcast %260 : vector<8x1xf32> to vector<8x8xf32>
    %262 = arith.mulf %257, %261 : vector<8x8xf32>
    %cst_91 = arith.constant dense<0.000000e+00> : vector<8x16xf32>
    %263 = tpu.matmul %262, %249, %cst_91 {dimension_numbers = #tpu.dot_dimension_numbers<[1], [0], [0], [1], [0, 0, 1, 1], [], []>} : vector<8x8xf32>, vector<8x16xf32>, vector<8x16xf32> -> vector<8x16xf32>
    %c8_92 = arith.constant 8 : index
    %c0_93 = arith.constant 0 : index
    %264 = vector.load %arg12[%c8_92, %c0_93] : memref<16x32xf32, #tpu.memory_space<vmem>>, vector<8x16xf32>
    tpu.vector_store %arg12[%c8_92, %c0_93], %263 {strides = array<i32>} : memref<16x32xf32, #tpu.memory_space<vmem>>, vector<8x16xf32>,
    %265 = vector.extract_strided_slice %225 {offsets = [0, 16], sizes = [16, 16], strides = [1, 1]} : vector<16x96xf32> to vector<16x16xf32>
    %266 = vector.extract_strided_slice %225 {offsets = [0, 48], sizes = [16, 16], strides = [1, 1]} : vector<16x96xf32> to vector<16x16xf32>
    %267 = vector.extract_strided_slice %225 {offsets = [0, 80], sizes = [16, 16], strides = [1, 1]} : vector<16x96xf32> to vector<16x16xf32>
    %268 = vector.extract_strided_slice %265 {offsets = [0, 0], sizes = [8, 16], strides = [1, 1]} : vector<16x16xf32> to vector<8x16xf32>
    %269 = vector.extract_strided_slice %266 {offsets = [0, 0], sizes = [8, 16], strides = [1, 1]} : vector<16x16xf32> to vector<8x16xf32>
    %270 = vector.extract_strided_slice %267 {offsets = [0, 0], sizes = [8, 16], strides = [1, 1]} : vector<16x16xf32> to vector<8x16xf32>
    %cst_94 = arith.constant dense<0.000000e+00> : vector<8x8xf32>
    %271 = tpu.matmul %268, %269, %cst_94 {dimension_numbers = #tpu.dot_dimension_numbers<[1], [1], [0], [0], [0, 0, 1, 0], [], []>} : vector<8x16xf32>, vector<8x16xf32>, vector<8x8xf32> -> vector<8x8xf32>
    %cst_95 = arith.constant 2.500000e-01 : f32
    %272 = vector.broadcast %cst_95 : f32 to vector<8x8xf32>
    %273 = arith.mulf %271, %272 : vector<8x8xf32>
    %cst_96 = arith.constant dense<0xFF800000> : vector<8xf32>
    %274 = vector.multi_reduction <maximumf>, %273, %cst_96 [1] : vector<8x8xf32> to vector<8xf32>
    %275 = vector.shape_cast %274 : vector<8xf32> to vector<8x1xf32>
    %276 = vector.broadcast %275 : vector<8x1xf32> to vector<8x8xf32>
    %277 = arith.subf %273, %276 : vector<8x8xf32>
    %278 = math.exp %277 : vector<8x8xf32>
    %cst_97 = arith.constant dense<0.000000e+00> : vector<8xf32>
    %279 = vector.multi_reduction <add>, %278, %cst_97 [1] : vector<8x8xf32> to vector<8xf32>
    %280 = vector.shape_cast %279 : vector<8xf32> to vector<8x1xf32>
    %281 = tpu.reciprocal %280 {approx = true} : vector<8x1xf32> -> vector<8x1xf32>
    %282 = vector.broadcast %281 : vector<8x1xf32> to vector<8x8xf32>
    %283 = arith.mulf %278, %282 : vector<8x8xf32>
    %cst_98 = arith.constant dense<0.000000e+00> : vector<8x16xf32>
    %284 = tpu.matmul %283, %270, %cst_98 {dimension_numbers = #tpu.dot_dimension_numbers<[1], [0], [0], [1], [0, 0, 1, 1], [], []>} : vector<8x8xf32>, vector<8x16xf32>, vector<8x16xf32> -> vector<8x16xf32>
    %c0_99 = arith.constant 0 : index
    %c16_100 = arith.constant 16 : index
    %285 = vector.load %arg12[%c0_99, %c16_100] : memref<16x32xf32, #tpu.memory_space<vmem>>, vector<8x16xf32>
    tpu.vector_store %arg12[%c0_99, %c16_100], %284 {strides = array<i32>} : memref<16x32xf32, #tpu.memory_space<vmem>>, vector<8x16xf32>,
    %286 = vector.extract_strided_slice %265 {offsets = [8, 0], sizes = [8, 16], strides = [1, 1]} : vector<16x16xf32> to vector<8x16xf32>
    %287 = vector.extract_strided_slice %266 {offsets = [8, 0], sizes = [8, 16], strides = [1, 1]} : vector<16x16xf32> to vector<8x16xf32>
    %288 = vector.extract_strided_slice %267 {offsets = [8, 0], sizes = [8, 16], strides = [1, 1]} : vector<16x16xf32> to vector<8x16xf32>
    %cst_101 = arith.constant dense<0.000000e+00> : vector<8x8xf32>
    %289 = tpu.matmul %286, %287, %cst_101 {dimension_numbers = #tpu.dot_dimension_numbers<[1], [1], [0], [0], [0, 0, 1, 0], [], []>} : vector<8x16xf32>, vector<8x16xf32>, vector<8x8xf32> -> vector<8x8xf32>
    %cst_102 = arith.constant 2.500000e-01 : f32
    %290 = vector.broadcast %cst_102 : f32 to vector<8x8xf32>
    %291 = arith.mulf %289, %290 : vector<8x8xf32>
    %cst_103 = arith.constant dense<0xFF800000> : vector<8xf32>
    %292 = vector.multi_reduction <maximumf>, %291, %cst_103 [1] : vector<8x8xf32> to vector<8xf32>
    %293 = vector.shape_cast %292 : vector<8xf32> to vector<8x1xf32>
    %294 = vector.broadcast %293 : vector<8x1xf32> to vector<8x8xf32>
    %295 = arith.subf %291, %294 : vector<8x8xf32>
    %296 = math.exp %295 : vector<8x8xf32>
    %cst_104 = arith.constant dense<0.000000e+00> : vector<8xf32>
    %297 = vector.multi_reduction <add>, %296, %cst_104 [1] : vector<8x8xf32> to vector<8xf32>
    %298 = vector.shape_cast %297 : vector<8xf32> to vector<8x1xf32>
    %299 = tpu.reciprocal %298 {approx = true} : vector<8x1xf32> -> vector<8x1xf32>
    %300 = vector.broadcast %299 : vector<8x1xf32> to vector<8x8xf32>
    %301 = arith.mulf %296, %300 : vector<8x8xf32>
    %cst_105 = arith.constant dense<0.000000e+00> : vector<8x16xf32>
    %302 = tpu.matmul %301, %288, %cst_105 {dimension_numbers = #tpu.dot_dimension_numbers<[1], [0], [0], [1], [0, 0, 1, 1], [], []>} : vector<8x8xf32>, vector<8x16xf32>, vector<8x16xf32> -> vector<8x16xf32>
    %c8_106 = arith.constant 8 : index
    %c16_107 = arith.constant 16 : index
    %303 = vector.load %arg12[%c8_106, %c16_107] : memref<16x32xf32, #tpu.memory_space<vmem>>, vector<8x16xf32>
    tpu.vector_store %arg12[%c8_106, %c16_107], %302 {strides = array<i32>} : memref<16x32xf32, #tpu.memory_space<vmem>>, vector<8x16xf32>,
    %c0_108 = arith.constant 0 : index
    %c0_109 = arith.constant 0 : index
    %304 = vector.load %arg12[%c0_108, %c0_109] : memref<16x32xf32, #tpu.memory_space<vmem>>, vector<16x32xf32>
    %c1_110 = arith.constant 1 : index
    %c0_111 = arith.constant 0 : index
    %c0_112 = arith.constant 0 : index
    %305 = vector.load %arg4[%c1_110, %c0_111, %c0_112] : memref<2x32x32xf32, #tpu.memory_space<vmem>>, vector<1x32x32xf32>
    %306 = vector.shape_cast %305 : vector<1x32x32xf32> to vector<32x32xf32>
    %cst_113 = arith.constant dense<0.000000e+00> : vector<16x32xf32>
    %307 = tpu.matmul %304, %306, %cst_113 {dimension_numbers = #tpu.dot_dimension_numbers<[1], [0], [0], [1], [0, 0, 1, 1], [], []>} : vector<16x32xf32>, vector<32x32xf32>, vector<16x32xf32> -> vector<16x32xf32>
    %308 = vector.broadcast %195 : vector<1x32xf32> to vector<16x32xf32>
    %309 = arith.addf %307, %308 : vector<16x32xf32>
    %310 = arith.addf %190, %309 : vector<16x32xf32>
    %cst_114 = arith.constant dense<0.000000e+00> : vector<16xf32>
    %311 = vector.multi_reduction <add>, %310, %cst_114 [1] : vector<16x32xf32> to vector<16xf32>
    %312 = vector.shape_cast %311 : vector<16xf32> to vector<16x1xf32>
    %cst_115 = arith.constant 3.200000e+01 : f32
    %313 = vector.broadcast %cst_115 : f32 to vector<16x1xf32>
    %314 = arith.divf %312, %313 : vector<16x1xf32>
    %315 = vector.broadcast %314 : vector<16x1xf32> to vector<16x32xf32>
    %316 = arith.subf %310, %315 : vector<16x32xf32>
    %317 = vector.broadcast %314 : vector<16x1xf32> to vector<16x32xf32>
    %318 = arith.subf %310, %317 : vector<16x32xf32>
    %319 = arith.mulf %316, %318 : vector<16x32xf32>
    %cst_116 = arith.constant dense<0.000000e+00> : vector<16xf32>
    %320 = vector.multi_reduction <add>, %319, %cst_116 [1] : vector<16x32xf32> to vector<16xf32>
    %321 = vector.shape_cast %320 : vector<16xf32> to vector<16x1xf32>
    %cst_117 = arith.constant 3.200000e+01 : f32
    %322 = vector.broadcast %cst_117 : f32 to vector<16x1xf32>
    %323 = arith.divf %321, %322 : vector<16x1xf32>
    %324 = vector.broadcast %314 : vector<16x1xf32> to vector<16x32xf32>
    %325 = arith.subf %310, %324 : vector<16x32xf32>
    %cst_118 = arith.constant 9.99999974E-6 : f32
    %326 = vector.broadcast %cst_118 : f32 to vector<16x1xf32>
    %327 = arith.addf %323, %326 : vector<16x1xf32>
    %328 = math.rsqrt %327 : vector<16x1xf32>
    %329 = vector.broadcast %328 : vector<16x1xf32> to vector<16x32xf32>
    %330 = arith.mulf %325, %329 : vector<16x32xf32>
    %331 = vector.broadcast %196 : vector<1x32xf32> to vector<16x32xf32>
    %332 = arith.mulf %330, %331 : vector<16x32xf32>
    %333 = vector.broadcast %197 : vector<1x32xf32> to vector<16x32xf32>
    %334 = arith.addf %332, %333 : vector<16x32xf32>
    %c1_119 = arith.constant 1 : index
    %c0_120 = arith.constant 0 : index
    %c0_121 = arith.constant 0 : index
    %335 = vector.load %arg5[%c1_119, %c0_120, %c0_121] : memref<2x32x64xf32, #tpu.memory_space<vmem>>, vector<1x32x64xf32>
    %336 = vector.shape_cast %335 : vector<1x32x64xf32> to vector<32x64xf32>
    %cst_122 = arith.constant dense<0.000000e+00> : vector<16x64xf32>
    %337 = tpu.matmul %334, %336, %cst_122 {dimension_numbers = #tpu.dot_dimension_numbers<[1], [0], [0], [1], [0, 0, 1, 1], [], []>} : vector<16x32xf32>, vector<32x64xf32>, vector<16x64xf32> -> vector<16x64xf32>
    %c1_123 = arith.constant 1 : index
    %c0_124 = arith.constant 0 : index
    %c0_125 = arith.constant 0 : index
    %338 = vector.load %arg8[%c1_123, %c0_124, %c0_125] : memref<2x1x64xf32, #tpu.memory_space<vmem>>, vector<1x1x64xf32>
    %339 = vector.shape_cast %338 : vector<1x1x64xf32> to vector<1x64xf32>
    %340 = vector.broadcast %339 : vector<1x64xf32> to vector<16x64xf32>
    %341 = arith.addf %337, %340 : vector<16x64xf32>
    %cst_126 = arith.constant 0.000000e+00 : f32
    %342 = vector.broadcast %cst_126 : f32 to vector<16x64xf32>
    %343 = arith.maximumf %341, %342 : vector<16x64xf32>
    %c1_127 = arith.constant 1 : index
    %c0_128 = arith.constant 0 : index
    %c0_129 = arith.constant 0 : index
    %344 = vector.load %arg6[%c1_127, %c0_128, %c0_129] : memref<2x64x32xf32, #tpu.memory_space<vmem>>, vector<1x64x32xf32>
    %345 = vector.shape_cast %344 : vector<1x64x32xf32> to vector<64x32xf32>
    %cst_130 = arith.constant dense<0.000000e+00> : vector<16x32xf32>
    %346 = tpu.matmul %343, %345, %cst_130 {dimension_numbers = #tpu.dot_dimension_numbers<[1], [0], [0], [1], [0, 0, 1, 1], [], []>} : vector<16x64xf32>, vector<64x32xf32>, vector<16x32xf32> -> vector<16x32xf32>
    %347 = vector.broadcast %198 : vector<1x32xf32> to vector<16x32xf32>
    %348 = arith.addf %346, %347 : vector<16x32xf32>
    %349 = arith.addf %310, %348 : vector<16x32xf32>
    %c0_131 = arith.constant 0 : index
    %c0_132 = arith.constant 0 : index
    %350 = vector.load %arg9[%c0_131, %c0_132] : memref<2x32xf32, #tpu.memory_space<vmem>>, vector<2x32xf32>
    %351 = vector.extract_strided_slice %350 {offsets = [0, 0], sizes = [1, 32], strides = [1, 1]} : vector<2x32xf32> to vector<1x32xf32>
    %352 = vector.extract_strided_slice %350 {offsets = [1, 0], sizes = [1, 32], strides = [1, 1]} : vector<2x32xf32> to vector<1x32xf32>
    %cst_133 = arith.constant dense<0.000000e+00> : vector<16xf32>
    %353 = vector.multi_reduction <add>, %349, %cst_133 [1] : vector<16x32xf32> to vector<16xf32>
    %354 = vector.shape_cast %353 : vector<16xf32> to vector<16x1xf32>
    %cst_134 = arith.constant 3.200000e+01 : f32
    %355 = vector.broadcast %cst_134 : f32 to vector<16x1xf32>
    %356 = arith.divf %354, %355 : vector<16x1xf32>
    %357 = vector.broadcast %356 : vector<16x1xf32> to vector<16x32xf32>
    %358 = arith.subf %349, %357 : vector<16x32xf32>
    %359 = vector.broadcast %356 : vector<16x1xf32> to vector<16x32xf32>
    %360 = arith.subf %349, %359 : vector<16x32xf32>
    %361 = arith.mulf %358, %360 : vector<16x32xf32>
    %cst_135 = arith.constant dense<0.000000e+00> : vector<16xf32>
    %362 = vector.multi_reduction <add>, %361, %cst_135 [1] : vector<16x32xf32> to vector<16xf32>
    %363 = vector.shape_cast %362 : vector<16xf32> to vector<16x1xf32>
    %cst_136 = arith.constant 3.200000e+01 : f32
    %364 = vector.broadcast %cst_136 : f32 to vector<16x1xf32>
    %365 = arith.divf %363, %364 : vector<16x1xf32>
    %366 = vector.broadcast %356 : vector<16x1xf32> to vector<16x32xf32>
    %367 = arith.subf %349, %366 : vector<16x32xf32>
    %cst_137 = arith.constant 9.99999974E-6 : f32
    %368 = vector.broadcast %cst_137 : f32 to vector<16x1xf32>
    %369 = arith.addf %365, %368 : vector<16x1xf32>
    %370 = math.rsqrt %369 : vector<16x1xf32>
    %371 = vector.broadcast %370 : vector<16x1xf32> to vector<16x32xf32>
    %372 = arith.mulf %367, %371 : vector<16x32xf32>
    %373 = vector.broadcast %351 : vector<1x32xf32> to vector<16x32xf32>
    %374 = arith.mulf %372, %373 : vector<16x32xf32>
    %375 = vector.broadcast %352 : vector<1x32xf32> to vector<16x32xf32>
    %376 = arith.addf %374, %375 : vector<16x32xf32>
    %c0_138 = arith.constant 0 : index
    %c0_139 = arith.constant 0 : index
    %377 = vector.load %arg10[%c0_138, %c0_139] : memref<33x14xf32, #tpu.memory_space<vmem>>, vector<33x14xf32>
    %378 = vector.extract_strided_slice %377 {offsets = [0, 0], sizes = [32, 14], strides = [1, 1]} : vector<33x14xf32> to vector<32x14xf32>
    %cst_140 = arith.constant dense<0.000000e+00> : vector<16x14xf32>
    %379 = tpu.matmul %376, %378, %cst_140 {dimension_numbers = #tpu.dot_dimension_numbers<[1], [0], [0], [1], [0, 0, 1, 1], [], []>} : vector<16x32xf32>, vector<32x14xf32>, vector<16x14xf32> -> vector<16x14xf32>
    %380 = vector.extract_strided_slice %377 {offsets = [32, 0], sizes = [1, 14], strides = [1, 1]} : vector<33x14xf32> to vector<1x14xf32>
    %381 = vector.broadcast %380 : vector<1x14xf32> to vector<16x14xf32>
    %382 = arith.addf %379, %381 : vector<16x14xf32>
    %c0_141 = arith.constant 0 : index
    %c0_142 = arith.constant 0 : index
    %383 = vector.load %arg11[%c0_141, %c0_142] : memref<16x14xf32, #tpu.memory_space<vmem>>, vector<16x14xf32>
    tpu.vector_store %arg11[%c0_141, %c0_142], %382 {strides = array<i32>} : memref<16x14xf32, #tpu.memory_space<vmem>>, vector<16x14xf32>,
    return
  }
  func.func @transform_0(%arg0: i32) -> (i32, i32) {
    %c0_i32 = arith.constant 0 : i32
    %c0_i32_0 = arith.constant 0 : i32
    %c0_i32_1 = arith.constant 0 : i32
    return %c0_i32, %c0_i32_0 : i32, i32
  }
  func.func @transform_1(%arg0: i32) -> (i32, i32) {
    %c0_i32 = arith.constant 0 : i32
    %c0_i32_0 = arith.constant 0 : i32
    %c0_i32_1 = arith.constant 0 : i32
    return %c0_i32, %c0_i32_0 : i32, i32
  }
  func.func @transform_2(%arg0: i32) -> (i32, i32, i32) {
    %c0_i32 = arith.constant 0 : i32
    %c0_i32_0 = arith.constant 0 : i32
    %c0_i32_1 = arith.constant 0 : i32
    %c0_i32_2 = arith.constant 0 : i32
    return %c0_i32, %c0_i32_0, %c0_i32_1 : i32, i32, i32
  }
  func.func @transform_3(%arg0: i32) -> (i32, i32, i32) {
    %c0_i32 = arith.constant 0 : i32
    %c0_i32_0 = arith.constant 0 : i32
    %c0_i32_1 = arith.constant 0 : i32
    %c0_i32_2 = arith.constant 0 : i32
    return %c0_i32, %c0_i32_0, %c0_i32_1 : i32, i32, i32
  }
  func.func @transform_4(%arg0: i32) -> (i32, i32, i32) {
    %c0_i32 = arith.constant 0 : i32
    %c0_i32_0 = arith.constant 0 : i32
    %c0_i32_1 = arith.constant 0 : i32
    %c0_i32_2 = arith.constant 0 : i32
    return %c0_i32, %c0_i32_0, %c0_i32_1 : i32, i32, i32
  }
  func.func @transform_5(%arg0: i32) -> (i32, i32, i32) {
    %c0_i32 = arith.constant 0 : i32
    %c0_i32_0 = arith.constant 0 : i32
    %c0_i32_1 = arith.constant 0 : i32
    %c0_i32_2 = arith.constant 0 : i32
    return %c0_i32, %c0_i32_0, %c0_i32_1 : i32, i32, i32
  }
  func.func @transform_6(%arg0: i32) -> (i32, i32, i32) {
    %c0_i32 = arith.constant 0 : i32
    %c0_i32_0 = arith.constant 0 : i32
    %c0_i32_1 = arith.constant 0 : i32
    %c0_i32_2 = arith.constant 0 : i32
    return %c0_i32, %c0_i32_0, %c0_i32_1 : i32, i32, i32
  }
  func.func @transform_7(%arg0: i32) -> (i32, i32, i32) {
    %c0_i32 = arith.constant 0 : i32
    %c0_i32_0 = arith.constant 0 : i32
    %c0_i32_1 = arith.constant 0 : i32
    %c0_i32_2 = arith.constant 0 : i32
    return %c0_i32, %c0_i32_0, %c0_i32_1 : i32, i32, i32
  }
  func.func @transform_8(%arg0: i32) -> (i32, i32) {
    %c0_i32 = arith.constant 0 : i32
    %c0_i32_0 = arith.constant 0 : i32
    %c0_i32_1 = arith.constant 0 : i32
    return %c0_i32, %c0_i32_0 : i32, i32
  }
  func.func @transform_9(%arg0: i32) -> (i32, i32) {
    %c0_i32 = arith.constant 0 : i32
    %c0_i32_0 = arith.constant 0 : i32
    %c0_i32_1 = arith.constant 0 : i32
    return %c0_i32, %c0_i32_0 : i32, i32
  }
  func.func @transform_10(%arg0: i32) -> (i32, i32) {
    %c0_i32 = arith.constant 0 : i32
    %c0_i32_0 = arith.constant 0 : i32
    %c0_i32_1 = arith.constant 0 : i32
    return %c0_i32, %c0_i32_0 : i32, i32
  }
}

</mosaic_0001>

<bundles_post_ra>
// kernel: tpu_custom_call.1
= control target key start
LH: loop header
LB: loop body
LE: loop exit
PB: predicated region body
PF: predicated region fallthrough
CT: control target
= control target key end

     0   :  { %v3137_v2 = vmov 0   ;;  %s3669_s0 = inlined_call_operand.vmem [shape: s32[16,1], index: 0, kind: input, shape index: {}]   ;;  %s3670_s1 = inlined_call_operand.vmem [shape: f32[30,32], index: 1, kind: input, shape index: {}]   ;;  %s3671_s2 = inlined_call_operand.vmem [shape: f32[2,32,96], index: 2, kind: input, shape index: {}]   ;;  %s3672_s3 = inlined_call_operand.vmem [shape: f32[2,32,32], index: 3, kind: input, shape index: {}]   ;;  %s3673_s4 = inlined_call_operand.vmem [shape: f32[2,32,64], index: 4, kind: input, shape index: {}]   ;;  %s3674_s5 = inlined_call_operand.vmem [shape: f32[2,64,32], index: 5, kind: input, shape index: {}]   ;;  %s3675_s6 = inlined_call_operand.vmem [shape: f32[2,6,32], index: 6, kind: input, shape index: {}]   ;;  %s3676_s7 = inlined_call_operand.vmem [shape: f32[2,1,64], index: 7, kind: input, shape index: {}]   ;;  %s3677_s8 = inlined_call_operand.vmem [shape: f32[2,32], index: 8, kind: input, shape index: {}]   ;;  %s3678_s9 = inlined_call_operand.vmem [shape: f32[33,14], index: 9, kind: input, shape index: {}]   ;;  %s3679_s10 = inlined_call_operand.hbm [shape: f32[16,14], index: 10, kind: output, shape index: {}]  }
   0x1   :  { %v71_v0 = vld [vmem:[%s3669_s0] sm:$0xff]  ;;  %3060 = vset.pattern.permute.xlu0 %v3137_v2  ;;  %v88_v3 = vld [vmem:[%s3670_s1 + $0x8] sm:$0xff] }
   0x2   :  { %v87_v1 = vld [vmem:[%s3670_s1] sm:$0xff] }
   0x3   :  { %15 = vsyncpa [#allocation4], 0  ;;  %74 = vperm.xlu0 %3060, %v71_v0   ;;  %v2949_v4 = vpack.c.bf16 %v88_v3, %v87_v1  ;;  %v89_v5 = vld [vmem:[%s3670_s1 + $0x10] sm:$0xff]  ;;  %v90_v6 = vld [vmem:[%s3670_s1 + $0x18] sm:$0x3f]  ;;  %vm98_vm0 = vcmask 1045504   ;;  %v36_v10 = vlaneseq }
   0x4   :  { %v72_v7 = vld [vmem:[%s3669_s0 + $0x8] sm:$0xff]  ;;  %v2953_v8 = vpack.c.bf16 %v90_v6, %v89_v5  ;;  %vm3138_vm1 = vmmov 1   ;;  %v3139_v9 = vmov 0.0   ;;  %vm91_vm5 = vcmask 244736   ;;  %v218_v36 = vld [vmem:[%s3671_s2] sm:$0xff]  ;;  %v220_v38 = vld [vmem:[%s3671_s2 + $0x10] sm:$0xff] }
   0x5   :  { %2950 = vmatprep.subr.bf16.mxu0 %v2949_v4  ;;  %vm2954_vm2 = vmpackc.low %vm98_vm0, %vm3138_vm1  ;;  %v3224_v11 = vshrl.u32 %v36_v10, 7  ;;  %v37_v14 = vand.u32 127, %v36_v10  ;;  %vm178_vm10 = vcmask 261120   ;;  %v219_v37 = vld [vmem:[%s3671_s2 + $0x8] sm:$0xff]  ;;  %v221_v40 = vld [vmem:[%s3671_s2 + $0x18] sm:$0xff]  ;;  %vm3140_vm11 = vmmov 0  }
   0x6   :  { %2952 = vmatpush3.bf16.msra.mxu0 %v2949_v4  ;;  %v2959_v39 = vpack.c.bf16 %v219_v37, %v218_v36  ;;  %v2963_v41 = vpack.c.bf16 %v221_v40, %v220_v38  ;;  %v3261_v49 = vld [vmem:[%s3675_s6] sm:$0x3f]  ;;  %s3141_s13 = smov 80   ;;  %s3142_s14 = smov 96   ;;  %vm306_vm12 = vcmask 130048   ;;  %vm382_vm13 = vcmask 64512  }
   0x7   :  { %77 = vperm.xlu0 %3060, %v72_v7   ;;  %2955 = vmatprep.subr.msk.bf16.mxu0 %vm2954_vm2, %v2953_v8  ;;  %v40_v12 = vadd.s32 8, %v3224_v11  ;;  %v45_v13 = vand.u32 7, %v3224_v11  ;;  %v3256_v48 = vsub.s32 0, %v3224_v11  ;;  %v3264_v50 = vsub.s32 1, %v3224_v11  ;;  %s3143_s15 = smov 112   ;;  %s3144_s16 = smov 64  }
   0x8   :  { %2960 = vmatprep.subr.bf16.mxu1 %v2959_v39  ;;  %s3145_s17 = smov 48   ;;  %s3146_s1 = smov 16   ;;  %vm807_vm14 = vcmask 261248   ;;  %vm1217_vm15 = vcmask 523264   ;;  %vm2554_vm0 = vcmask 113664  }
   0x9   :  { %v52_v15 = vand.u32 7, %v40_v12  ;;  %v69_v16 = vadd.s32 14, %v45_v13  ;;  %2962 = vmatpush3.bf16.msra.mxu1 %v2959_v39  ;;  %v209_v51 = vrot.slane %v3261_v49, %v3256_v48  ;;  %v215_v54 = vrot.slane %v3261_v49, %v3264_v50 }
   0xa   :  { %2958 = vmatpush3.bf16.msk.msra.mxu0 %vm2954_vm2, %v2953_v8  ;;  %2964 = vmatprep.subr.bf16.mxu1 %v2963_v41 }
   0xb   :  { %2775 = vmatprep.subr.mxu0 %v3139_v9  ;;  %v70_v17 = vadd.s32 14, %v52_v15  ;;  %vm81_vm3 = vcmp.eq.s32.totalorder %v37_v14, %v69_v16 }
   0xd   :  { %vm82_vm7 = vcmp.eq.s32.totalorder %v37_v14, %v70_v17  ;;  %2966 = vmatpush3.bf16.msra.mxu1 %v2963_v41 }
   0xe   :  { %2765 = vmatprep.subr.mxu1 %v3139_v9 }
  0x82   :  { %v75_v18 = vpop.permute.xlu0 %74 }
  0x83   :  { %vm79_vm4 = vcmp.eq.s32.totalorder %v37_v14, %v75_v18 }
  0x84   :  { %vm83_vm6 = vmor %vm79_vm4, %vm81_vm3 }
  0x85   :  { %v85_v19 = vsel %vm83_vm6, 1.0, %v3139_v9 }
  0x86   :  { %v78_v20 = vpop.permute.xlu0 %77  ;;  %2751 = vmatprep.mubr.msk.f32.mxu0 %vm91_vm5, %v85_v19 }
  0x87   :  { %vm80_vm8 = vcmp.eq.s32.totalorder %v37_v14, %v78_v20 }
  0x88   :  { %vm84_vm9 = vmor %vm80_vm8, %vm82_vm7 }
  0x89   :  { %v86_v21 = vsel %vm84_vm9, 1.0, %v3139_v9 }
  0x8a   :  { %2752 = vmatmul.mubr.msk.f32.vlgmr.msra.gmra.mrb[0].mxu0 %vm91_vm5, %v86_v21 }
  0x8b   :  { %2777 = vmatprep.mubr.msk.f32.mxu0 %vm3140_vm11, %v3139_v9 }
 0x15d   :  { %v3230_v22 = vpop.f32.mrb[0].mxu0 }
 0x15e   :  { %v3232_v23 = vpop.f32.mrb[1].mxu0  ;;  %v182_v25 = vsel %vm178_vm10, %v3230_v22, 0.0 }
 0x15f   :  { %v179_v24 = vsel %vm178_vm10, %v3232_v23, 0.0 }
 0x160   :  { %180 = vadd.xlane.f32.xlu1 %v179_v24 }
 0x164   :  { %183 = vadd.xlane.f32.xlu1 %v182_v25 }
 0x1ed   :  { %v181_v26 = vpop.xlane.xlu1 %180 }
 0x1ee   :  { %v186_v27 = vmul.f32 0.03125, %v181_v26 }
 0x1f0   :  { %v188_v28 = vsub.f32 %v3232_v23, %v186_v27 }
 0x1f1   :  { %v184_v29 = vpop.xlane.xlu1 %183 }
 0x1f2   :  { %v187_v30 = vmul.f32 0.03125, %v184_v29  ;;  %v190_v31 = vmul.f32 %v188_v28, %v188_v28 }
 0x1f4   :  { %v189_v32 = vsub.f32 %v3230_v22, %v187_v30  ;;  %v192_v33 = vsel %vm178_vm10, %v190_v31, 0.0 }
 0x1f5   :  { %193 = vadd.xlane.f32.xlu0 %v192_v33 }
 0x1f6   :  { %v191_v34 = vmul.f32 %v189_v32, %v189_v32 }
 0x1f8   :  { %v195_v35 = vsel %vm178_vm10, %v191_v34, 0.0 }
 0x1f9   :  { %196 = vadd.xlane.f32.xlu1 %v195_v35 }
 0x282   :  { %v194_v42 = vpop.xlane.xlu0 %193 }
 0x283   :  { %v198_v43 = vmul.f32 0.03125, %v194_v42 }
 0x285   :  { %v200_v44 = vadd.f32 1e-05, %v198_v43 }
 0x286   :  { %v197_v45 = vpop.xlane.xlu1 %196 }
 0x287   :  { %3061 = vrsqrt.f32 %v200_v44  ;;  %v199_v46 = vmul.f32 0.03125, %v197_v45 }
 0x289   :  { %v201_v47 = vadd.f32 1e-05, %v199_v46 }
 0x28b   :  { %3063 = vrsqrt.f32 %v201_v47 }
 0x291   :  { %v3062_v52 = vpop.eup %3061 }
 0x292   :  { %v204_v53 = vmul.f32 %v3062_v52, %v188_v28 }
 0x294   :  { %v210_v55 = vmul.f32 %v209_v51, %v204_v53 }
 0x295   :  { %v3064_v56 = vpop.eup %3063 }
 0x296   :  { %v205_v57 = vmul.f32 %v3064_v56, %v189_v32  ;;  %v216_v58 = vadd.f32 %v215_v54, %v210_v55 }
 0x298   :  { %v211_v59 = vmul.f32 %v209_v51, %v205_v57  ;;  %2762 = vmatprep.mubr.msk.f32.mxu1 %vm178_vm10, %v216_v58 }
 0x29a   :  { %v217_v60 = vadd.f32 %v215_v54, %v211_v59 }
 0x29c   :  { %2763 = vmatmul.mubr.msk.f32.vlgmr.msra.gmra.mrb[0].mxu1 %vm178_vm10, %v217_v60 }
 0x29d   :  { %2767 = vmatprep.mubr.msk.f32.mxu1 %vm3140_vm11, %v3139_v9 }
 0x36f   :  { %v3276_v61 = vpop.f32.mrb[0].mxu1 }
 0x370   :  { %811 = vrot.lane.b32.xlu0 %v3276_v61, %s3141_s13  ;;  %v3280_v62 = vpop.f32.mrb[1].mxu1 }
 0x371   :  { %304 = vrot.lane.b32.xlu1 %v3280_v62, %s3142_s14 }
 0x375   :  { %472 = vrot.lane.b32.xlu1 %v3276_v61, %s3142_s14 }
 0x379   :  { %639 = vrot.lane.b32.xlu1 %v3280_v62, %s3141_s13 }
 0x37d   :  { %637 = vrot.lane.b32.xlu1 %v3280_v62, %s3143_s15 }
 0x381   :  { %809 = vrot.lane.b32.xlu1 %v3276_v61, %s3143_s15 }
 0x3e2   :  { %v812_v3 = vpop.permute.xlu0 %811 }
 0x3e3   :  { %v305_v63 = vpop.permute.xlu1 %304 }
 0x3e4   :  { %2766 = vmatpush3.xpose.msk.msra.mxu1 %vm306_vm12, %v305_v63 }
 0x3e5   :  { %2770 = vmatprep.subr.mxu1 %v3139_v9 }
 0x3e7   :  { %2768 = vmatmul.mubr.msk.f32.vlgmr.msra.gmra.mrb[2].mxu1 %vm306_vm12, %v3280_v62  ;;  %v473_v0 = vpop.permute.xlu1 %472 }
 0x3e8   :  { %2776 = vmatpush3.xpose.msk.msra.mxu0 %vm306_vm12, %v473_v0  ;;  %2772 = vmatprep.mubr.msk.f32.mxu1 %vm3140_vm11, %v3139_v9  ;;  %v982_v0 = vld [vmem:[%s3672_s3] sm:$0xff] }
 0x3e9   :  { %2785 = vmatprep.subr.mxu0 %v3139_v9 }
 0x3eb   :  { %2778 = vmatmul.mubr.msk.f32.vlgmr.msra.gmra.mrb[2].mxu0 %vm306_vm12, %v3276_v61  ;;  %v640_v1 = vpop.permute.xlu1 %639 }
 0x3ec   :  { %2786 = vmatpush3.xpose.msk.msra.mxu0 %vm306_vm12, %v640_v1  ;;  %2787 = vmatprep.mubr.msk.f32.mxu0 %vm3140_vm11, %v3139_v9  ;;  %v983_v1 = vld [vmem:[%s3672_s3 + $0x8] sm:$0xff] }
 0x3ed   :  { %2795 = vmatprep.subr.mxu0 %v3139_v9 }
 0x3ef   :  { %v638_v2 = vpop.permute.xlu1 %637 }
 0x3f0   :  { %2788 = vmatmul.mubr.msk.f32.vlgmr.msra.gmra.mrb[4].mxu0 %vm306_vm12, %v638_v2 }
 0x3f1   :  { %2796 = vmatpush3.xpose.msk.msra.mxu0 %vm306_vm12, %v812_v3  ;;  %2797 = vmatprep.mubr.msk.f32.mxu0 %vm3140_vm11, %v3139_v9  ;;  %v2967_v3 = vpack.c.bf16 %v983_v1, %v982_v0  ;;  %v1101_v0 = vsub.s32 3, %v3224_v11  ;;  %v1107_v1 = vsub.s32 4, %v3224_v11 }
 0x3f3   :  { %v810_v4 = vpop.permute.xlu1 %809  ;;  %2968 = vmatprep.subr.bf16.mxu0 %v2967_v3 }
 0x3f4   :  { %2798 = vmatmul.mubr.msk.f32.vlgmr.msra.gmra.mrb[6].mxu0 %vm306_vm12, %v810_v4 }
 0x3f5   :  { %2970 = vmatpush3.bf16.msra.mxu0 %v2967_v3 }
 0x4ba   :  { %v377_v5 = vpop.f32.mrb[2].mxu1 }
 0x4bb   :  { %v381_v6 = vmul.f32 0.25, %v377_v5  ;;  %v2769_v7 = vpop.f32.mrb[3].mxu1  ;;  %v984_v5 = vld [vmem:[%s3672_s3 + $0x10] sm:$0xff] }
 0x4bd   :  { %v383_v8 = vsel %vm382_vm13, %v381_v6, -inf }
 0x4be   :  { %384 = vmax.xlane.f32.xlu1 %v383_v8  ;;  %v544_v10 = vpop.f32.mrb[2].mxu0 }
 0x4bf   :  { %v548_v12 = vmul.f32 0.25, %v544_v10  ;;  %v2779_v13 = vpop.f32.mrb[3].mxu0 }
 0x4c1   :  { %v549_v14 = vsel %vm382_vm13, %v548_v12, -inf }
 0x4c2   :  { %550 = vmax.xlane.f32.xlu0 %v549_v14 }
 0x4c3   :  { %v711_v15 = vpop.f32.mrb[4].mxu0 }
 0x4c4   :  { %v715_v16 = vmul.f32 0.25, %v711_v15  ;;  %v2789_v17 = vpop.f32.mrb[5].mxu0 }
 0x4c6   :  { %v716_v18 = vsel %vm382_vm13, %v715_v16, -inf }
 0x4c7   :  { %717 = vmax.xlane.f32.xlu1 %v716_v18  ;;  %v883_v19 = vpop.f32.mrb[6].mxu0 }
 0x4c8   :  { %v887_v20 = vmul.f32 0.25, %v883_v19  ;;  %v2799_v21 = vpop.f32.mrb[7].mxu0 }
 0x4ca   :  { %v888_v24 = vsel %vm382_vm13, %v887_v20, -inf }
 0x4cb   :  { %889 = vmax.xlane.f32.xlu1 %v888_v24 }
 0x4dc   :  { %394 = vrot.lane.b32.xlu1 %v3280_v62, %s3144_s16 }
 0x54b   :  { %v385_v25 = vpop.xlane.xlu1 %384 }
 0x54c   :  { %v386_v26 = vsub.f32 %v381_v6, %v385_v25  ;;  %v985_v6 = vld [vmem:[%s3672_s3 + $0x18] sm:$0xff] }
 0x54d   :  { %v2971_v7 = vpack.c.bf16 %v985_v6, %v984_v5  ;;  %v1108_v5 = vrot.slane %v3261_v49, %v1107_v1 }
 0x54e   :  { %v387_v27 = vmul.f32 1.442695, %v386_v26 }
 0x54f   :  { %v551_v28 = vpop.xlane.xlu0 %550  ;;  %2972 = vmatprep.subr.bf16.mxu0 %v2971_v7 }
 0x550   :  { %3065 = vpow2.f32 %v387_v27  ;;  %v552_v29 = vsub.f32 %v548_v12, %v551_v28  ;;  %2974 = vmatpush3.bf16.msra.mxu0 %v2971_v7 }
 0x552   :  { %v553_v30 = vmul.f32 1.442695, %v552_v29 }
 0x554   :  { %3067 = vpow2.f32 %v553_v30  ;;  %v718_v31 = vpop.xlane.xlu1 %717 }
 0x555   :  { %v719_v32 = vsub.f32 %v715_v16, %v718_v31 }
 0x557   :  { %v720_v33 = vmul.f32 1.442695, %v719_v32 }
 0x558   :  { %v890_v34 = vpop.xlane.xlu1 %889 }
 0x559   :  { %3069 = vpow2.f32 %v720_v33  ;;  %v891_v35 = vsub.f32 %v887_v20, %v890_v34  ;;  %v988_v20 = vsub.s32 2, %v3224_v11 }
 0x55a   :  { %v3066_v36 = vpop.eup %3065 }
 0x55b   :  { %v892_v37 = vmul.f32 1.442695, %v891_v35  ;;  %v389_v38 = vsel %vm382_vm13, %v3066_v36, 0.0  ;;  %v989_v21 = vrot.slane %v3261_v49, %v988_v20 }
 0x55c   :  { %390 = vadd.xlane.f32.xlu1 %v389_v38  ;;  %v395_v39 = vpop.permute.xlu1 %394 }
 0x55d   :  { %3071 = vpow2.f32 %v892_v37  ;;  %2771 = vmatpush3.msra.mxu1 %v395_v39 }
 0x55e   :  { %v3068_v40 = vpop.eup %3067  ;;  %2780 = vmatprep.subr.mxu1 %v3139_v9 }
 0x55f   :  { %v555_v41 = vsel %vm382_vm13, %v3068_v40, 0.0 }
 0x560   :  { %556 = vadd.xlane.f32.xlu0 %v555_v41  ;;  %v1112_v41 = vld [vmem:[%s3673_s4 + $0x8] sm:$0xff] }
 0x563   :  { %v3070_v42 = vpop.eup %3069 }
 0x564   :  { %v722_v43 = vsel %vm382_vm13, %v3070_v42, 0.0 }
 0x565   :  { %723 = vadd.xlane.f32.xlu1 %v722_v43  ;;  %v1113_v43 = vld [vmem:[%s3673_s4 + $0x10] sm:$0xff] }
 0x567   :  { %v3072_v44 = vpop.eup %3071 }
 0x568   :  { %v894_v45 = vsel %vm382_vm13, %v3072_v44, 0.0 }
 0x569   :  { %895 = vadd.xlane.f32.xlu0 %v894_v45 }
 0x576   :  { %727 = vrot.lane.b32.xlu1 %v3280_v62, %s3145_s17 }
 0x57a   :  { %899 = vrot.lane.b32.xlu1 %v3276_v61, %s3145_s17 }
 0x57f   :  { %560 = vrot.lane.b32.xlu0 %v3276_v61, %s3144_s16 }
 0x5e9   :  { %v391_v46 = vpop.xlane.xlu1 %390 }
 0x5ea   :  { %3073 = vrcp.f32 %v391_v46  ;;  %v1205_v46 = vld [vmem:[%s3674_s5] sm:$0xff] }
 0x5ed   :  { %v557_v47 = vpop.xlane.xlu0 %556 }
 0x5ee   :  { %3075 = vrcp.f32 %v557_v47  ;;  %v1206_v47 = vld [vmem:[%s3674_s5 + $0x8] sm:$0xff] }
 0x5f2   :  { %v724_v51 = vpop.xlane.xlu1 %723 }
 0x5f3   :  { %3077 = vrcp.f32 %v724_v51  ;;  %v1207_v51 = vld [vmem:[%s3674_s5 + $0x10] sm:$0xff] }
 0x5f4   :  { %v3074_v52 = vpop.eup %3073 }
 0x5f5   :  { %v393_v53 = vmul.f32 %v3074_v52, %v3066_v36  ;;  %v2983_v52 = vpack.c.bf16 %v1206_v47, %v1205_v46  ;;  %v2600_v47 = vld [vmem:[%s3671_s2 + $0x30] sm:$0xff] }
 0x5f6   :  { %v896_v54 = vpop.xlane.xlu0 %895  ;;  %v728_v57 = vpop.permute.xlu1 %727 }
 0x5f7   :  { %3079 = vrcp.f32 %v896_v54  ;;  %2773 = vmatmul.mubr.msk.f32.vlgmr.msra.gmra.mrb[4].mxu1 %vm382_vm13, %v393_v53  ;;  %v1208_v53 = vld [vmem:[%s3674_s5 + $0x18] sm:$0xff]  ;;  %2984 = vmatprep.subr.bf16.mxu0 %v2983_v52 }
 0x5f8   :  { %v3076_v55 = vpop.eup %3075  ;;  %2782 = vmatprep.mubr.msk.f32.mxu1 %vm3140_vm11, %v3139_v9  ;;  %v2987_v54 = vpack.c.bf16 %v1208_v53, %v1207_v51  ;;  %v2601_v51 = vld [vmem:[%s3671_s2 + $0x38] sm:$0xff] }
 0x5f9   :  { %v559_v56 = vmul.f32 %v3076_v55, %v3068_v40  ;;  %v1111_v40 = vld [vmem:[%s3673_s4] sm:$0xff] }
 0x5fa   :  { %v561_v58 = vpop.permute.xlu0 %560  ;;  %v900_v61 = vpop.permute.xlu1 %899  ;;  %v1209_v55 = vld [vmem:[%s3674_s5 + $0x20] sm:$0xff] }
 0x5fb   :  { %2781 = vmatpush3.msra.mxu1 %v561_v58 }
 0x5fc   :  { %2783 = vmatmul.mubr.msk.f32.vlgmr.msra.gmra.mrb[6].mxu1 %vm382_vm13, %v559_v56  ;;  %2790 = vmatprep.subr.mxu1 %v3139_v9  ;;  %v1210_v56 = vld [vmem:[%s3674_s5 + $0x28] sm:$0xff] }
 0x5fd   :  { %v3078_v59 = vpop.eup %3077  ;;  %2791 = vmatpush3.msra.mxu1 %v728_v57  ;;  %2792 = vmatprep.mubr.msk.f32.mxu1 %vm3140_vm11, %v3139_v9  ;;  %v2991_v57 = vpack.c.bf16 %v1210_v56, %v1209_v55 }
 0x5fe   :  { %v726_v60 = vmul.f32 %v3078_v59, %v3070_v42  ;;  %2800 = vmatprep.subr.mxu1 %v3139_v9  ;;  %v2975_v42 = vpack.c.bf16 %v1112_v41, %v1111_v40 }
 0x600   :  { %2793 = vmatmul.mubr.msk.f32.vlgmr.msra.gmra.mrb[8].mxu1 %vm382_vm13, %v726_v60 }
 0x601   :  { %v3080_v62 = vpop.eup %3079  ;;  %2801 = vmatpush3.msra.mxu1 %v900_v61  ;;  %2802 = vmatprep.mubr.msk.f32.mxu1 %vm3140_vm11, %v3139_v9 }
 0x602   :  { %v898_v63 = vmul.f32 %v3080_v62, %v3072_v44  ;;  %2976 = vmatprep.subr.bf16.mxu1 %v2975_v42  ;;  %v1114_v44 = vld [vmem:[%s3673_s4 + $0x18] sm:$0xff] }
 0x603   :  { %v2979_v45 = vpack.c.bf16 %v1114_v44, %v1113_v43  ;;  %v2598_v44 = vld [vmem:[%s3671_s2 + $0x20] sm:$0xff] }
 0x604   :  { %2803 = vmatmul.mubr.msk.f32.vlgmr.msra.gmra.mrb[10].mxu1 %vm382_vm13, %v898_v63 }
 0x605   :  { %2978 = vmatpush3.bf16.msra.mxu1 %v2975_v42 }
 0x606   :  { %2980 = vmatprep.subr.bf16.mxu1 %v2979_v45 }
 0x609   :  { %2982 = vmatpush3.bf16.msra.mxu1 %v2979_v45  ;;  %v2599_v45 = vld [vmem:[%s3671_s2 + $0x28] sm:$0xff] }
 0x60a   :  { %v2999_v46 = vpack.c.bf16 %v2599_v45, %v2598_v44 }
 0x60c   :  { %3000 = vmatprep.subr.bf16.mxu1 %v2999_v46 }
 0x6ca   :  { %v466_v2 = vpop.f32.mrb[4].mxu1 }
 0x6cb   :  { %470 = vst.msk [vmem:[#allocation2] sm:$0xff] %vm306_vm12, %v466_v2  ;;  %v2774_v4 = vpop.f32.mrb[5].mxu1  ;;  %v1102_v2 = vrot.slane %v3261_v49, %v1101_v0 }
 0x6cf   :  { %v632_v8 = vpop.f32.mrb[6].mxu1 }
 0x6d0   :  { %636 = vst.msk [vmem:[#allocation2 + $0x8] sm:$0xff] %vm306_vm12, %v632_v8  ;;  %v2784_v10 = vpop.f32.mrb[7].mxu1 }
 0x6d3   :  { %v799_v12 = vpop.f32.mrb[8].mxu1 }
 0x6d4   :  { %804 = vrot.lane.b32.xlu0 %v799_v12, %s3146_s1  ;;  %v2794_v13 = vpop.f32.mrb[9].mxu1 }
 0x6d7   :  { %v971_v14 = vpop.f32.mrb[10].mxu1 }
 0x6d8   :  { %976 = vrot.lane.b32.xlu1 %v971_v14, %s3146_s1  ;;  %v2804_v15 = vpop.f32.mrb[11].mxu1  ;;  %v1211_v14 = vld [vmem:[%s3674_s5 + $0x30] sm:$0xff] }
 0x6d9   :  { %v1212_v15 = vld [vmem:[%s3674_s5 + $0x38] sm:$0xff] }
 0x746   :  { %v805_v16 = vpop.permute.xlu0 %804 }
 0x747   :  { %808 = vst.msk [vmem:[#allocation2] sm:$0xff] %vm807_vm14, %v805_v16  ;;  %v2995_v16 = vpack.c.bf16 %v1212_v15, %v1211_v14 }
 0x74a   :  { %v977_v17 = vpop.permute.xlu1 %976 }
 0x74b   :  { %979 = vst.msk [vmem:[#allocation2 + $0x8] sm:$0xff] %vm807_vm14, %v977_v17  ;;  %v2592_v17 = vld [vmem:[%s3676_s7] ss:$0 sm:$0xff] }
 0x74e   :  { %v980_v18 = vld [vmem:[#allocation2] sm:$0xff] }
 0x74f   :  { %2813 = vmatprep.mubr.msk.f32.mxu0 %vm178_vm10, %v980_v18 }
 0x752   :  { %v981_v19 = vld [vmem:[#allocation2 + $0x8] sm:$0xff] }
 0x753   :  { %2814 = vmatmul.mubr.msk.f32.vlgmr.msra.gmra.mrb[8].mxu0 %vm178_vm10, %v981_v19 }
 0x754   :  { %2986 = vmatpush3.bf16.msra.mxu0 %v2983_v52  ;;  %v3003_v52 = vpack.c.bf16 %v2601_v51, %v2600_v47 }
 0x755   :  { %2988 = vmatprep.subr.bf16.mxu0 %v2987_v54 }
 0x758   :  { %2990 = vmatpush3.bf16.msra.mxu0 %v2987_v54 }
 0x759   :  { %2992 = vmatprep.subr.bf16.mxu0 %v2991_v57 }
 0x75c   :  { %2994 = vmatpush3.bf16.msra.mxu0 %v2991_v57 }
 0x75d   :  { %2996 = vmatprep.subr.bf16.mxu0 %v2995_v16 }
 0x760   :  { %2998 = vmatpush3.bf16.msra.mxu0 %v2995_v16 }
 0x761   :  { %2867 = vmatprep.subr.mxu0 %v3139_v9 }
 0x826   :  { %v2815_v24 = vpop.f32.mrb[8].mxu0 }
 0x827   :  { %v1068_v25 = vadd.f32 %v2815_v24, %v989_v21  ;;  %v1062_v26 = vpop.f32.mrb[9].mxu0 }
 0x828   :  { %v1063_v27 = vadd.f32 %v1062_v26, %v989_v21 }
 0x829   :  { %v3365_v28 = vadd.f32 %v3230_v22, %v1068_v25 }
 0x82a   :  { %v3368_v29 = vadd.f32 %v1063_v27, %v3232_v23  ;;  %v1215_v27 = vsub.s32 5, %v3224_v11 }
 0x82b   :  { %v1076_v30 = vsel %vm178_vm10, %v3365_v28, 0.0 }
 0x82c   :  { %1077 = vadd.xlane.f32.xlu1 %v1076_v30  ;;  %v1073_v31 = vsel %vm178_vm10, %v3368_v29, 0.0  ;;  %v1216_v30 = vrot.slane %v3261_v49, %v1215_v27 }
 0x82d   :  { %1074 = vadd.xlane.f32.xlu0 %v1073_v31 }
 0x8b9   :  { %v1078_v32 = vpop.xlane.xlu1 %1077 }
 0x8ba   :  { %v1080_v33 = vmul.f32 0.03125, %v1078_v32  ;;  %v1075_v34 = vpop.xlane.xlu0 %1074 }
 0x8bb   :  { %v1079_v35 = vmul.f32 0.03125, %v1075_v34 }
 0x8bc   :  { %v1082_v36 = vsub.f32 %v3365_v28, %v1080_v33 }
 0x8bd   :  { %v1081_v22 = vsub.f32 %v3368_v29, %v1079_v35 }
 0x8be   :  { %v1084_v38 = vmul.f32 %v1082_v36, %v1082_v36 }
 0x8bf   :  { %v1083_v37 = vmul.f32 %v1081_v22, %v1081_v22 }
 0x8c0   :  { %v1088_v39 = vsel %vm178_vm10, %v1084_v38, 0.0 }
 0x8c1   :  { %v1085_v23 = vsel %vm178_vm10, %v1083_v37, 0.0 }
 0x8c2   :  { %1086 = vadd.xlane.f32.xlu0 %v1085_v23 }
 0x8c6   :  { %1089 = vadd.xlane.f32.xlu0 %v1088_v39 }
 0x94f   :  { %v1087_v58 = vpop.xlane.xlu0 %1086 }
 0x950   :  { %v1091_v59 = vmul.f32 0.03125, %v1087_v58 }
 0x952   :  { %v1093_v60 = vadd.f32 1e-05, %v1091_v59  ;;  %v3466_v59 = vld [vmem:[%s3675_s6 + $0x8] sm:$0x3f] }
 0x953   :  { %v1090_v61 = vpop.xlane.xlu0 %1089 }
 0x954   :  { %3081 = vrsqrt.f32 %v1093_v60  ;;  %v1092_v62 = vmul.f32 0.03125, %v1090_v61  ;;  %v1332_v60 = vrot.slane %v3466_v59, %v3256_v48 }
 0x956   :  { %v1094_v63 = vadd.f32 1e-05, %v1092_v62 }
 0x958   :  { %3083 = vrsqrt.f32 %v1094_v63 }
 0x95e   :  { %v3082_v3 = vpop.eup %3081 }
 0x95f   :  { %v1097_v4 = vmul.f32 %v3082_v3, %v1081_v22  ;;  %v1338_v3 = vrot.slane %v3466_v59, %v3264_v50 }
 0x961   :  { %v1103_v6 = vmul.f32 %v1102_v2, %v1097_v4 }
 0x962   :  { %v3084_v7 = vpop.eup %3083 }
 0x963   :  { %v1098_v8 = vmul.f32 %v3084_v7, %v1082_v36  ;;  %v1109_v10 = vadd.f32 %v1108_v5, %v1103_v6 }
 0x965   :  { %v1104_v12 = vmul.f32 %v1102_v2, %v1098_v8  ;;  %2824 = vmatprep.mubr.msk.f32.mxu1 %vm178_vm10, %v1109_v10 }
 0x967   :  { %v1110_v13 = vadd.f32 %v1108_v5, %v1104_v12 }
 0x969   :  { %2825 = vmatmul.mubr.msk.f32.vlgmr.msra.gmra.mrb[12].mxu1 %vm178_vm10, %v1110_v13 }
 0x96a   :  { %3002 = vmatpush3.bf16.msra.mxu1 %v2999_v46 }
 0x96b   :  { %3004 = vmatprep.subr.bf16.mxu1 %v3003_v52 }
 0x96e   :  { %3006 = vmatpush3.bf16.msra.mxu1 %v3003_v52 }
 0x96f   :  { %2857 = vmatprep.subr.mxu1 %v3139_v9 }
 0xa3c   :  { %v2826_v18 = vpop.f32.mrb[12].mxu1 }
 0xa3d   :  { %v1200_v19 = vadd.f32 %v2826_v18, %v2592_v17  ;;  %v1194_v21 = vpop.f32.mrb[13].mxu1 }
 0xa3e   :  { %v1195_v24 = vadd.f32 %v2592_v17, %v1194_v21 }
 0xa3f   :  { %v1204_v26 = vmax.f32 %v1200_v19, 0.0 }
 0xa40   :  { %v1203_v25 = vmax.f32 %v1195_v24, 0.0 }
 0xa42   :  { %2843 = vmatprep.mubr.msk.f32.mxu0 %vm1217_vm15, %v1203_v25 }
 0xa43   :  { %2844 = vmatmul.mubr.msk.f32.vlgmr.msra.gmra.mrb[10].mxu0 %vm1217_vm15, %v1204_v26 }
 0xa44   :  { %2869 = vmatprep.mubr.msk.f32.mxu0 %vm3140_vm11, %v3139_v9 }
 0xb16   :  { %v2845_v31 = vpop.f32.mrb[10].mxu0 }
 0xb17   :  { %v1296_v32 = vadd.f32 %v2845_v31, %v1216_v30  ;;  %v1290_v33 = vpop.f32.mrb[11].mxu0 }
 0xb18   :  { %v1291_v34 = vadd.f32 %v1290_v33, %v1216_v30 }
 0xb19   :  { %v3437_v35 = vadd.f32 %v1296_v32, %v3365_v28 }
 0xb1a   :  { %v3440_v36 = vadd.f32 %v1291_v34, %v3368_v29 }
 0xb1b   :  { %v1306_v22 = vsel %vm178_vm10, %v3437_v35, 0.0 }
 0xb1c   :  { %1307 = vadd.xlane.f32.xlu0 %v1306_v22  ;;  %v1303_v37 = vsel %vm178_vm10, %v3440_v36, 0.0 }
 0xb1d   :  { %1304 = vadd.xlane.f32.xlu1 %v1303_v37 }
 0xba9   :  { %v1308_v23 = vpop.xlane.xlu0 %1307 }
 0xbaa   :  { %v1310_v49 = vmul.f32 0.03125, %v1308_v23  ;;  %v1305_v38 = vpop.xlane.xlu1 %1304 }
 0xbab   :  { %v1309_v39 = vmul.f32 0.03125, %v1305_v38 }
 0xbac   :  { %v1312_v40 = vsub.f32 %v3437_v35, %v1310_v49 }
 0xbad   :  { %v1311_v28 = vsub.f32 %v3440_v36, %v1309_v39 }
 0xbae   :  { %v1314_v41 = vmul.f32 %v1312_v40, %v1312_v40 }
 0xbaf   :  { %v1313_v42 = vmul.f32 %v1311_v28, %v1311_v28 }
 0xbb0   :  { %v1318_v29 = vsel %vm178_vm10, %v1314_v41, 0.0 }
 0xbb1   :  { %1319 = vadd.xlane.f32.xlu0 %v1318_v29  ;;  %v1315_v43 = vsel %vm178_vm10, %v1313_v42, 0.0 }
 0xbb2   :  { %1316 = vadd.xlane.f32.xlu1 %v1315_v43 }
 0xc3e   :  { %v1320_v53 = vpop.xlane.xlu0 %1319 }
 0xc3f   :  { %v1322_v54 = vmul.f32 0.03125, %v1320_v53  ;;  %v1317_v55 = vpop.xlane.xlu1 %1316 }
 0xc40   :  { %v1321_v56 = vmul.f32 0.03125, %v1317_v55 }
 0xc41   :  { %v1324_v57 = vadd.f32 1e-05, %v1322_v54 }
 0xc42   :  { %v1323_v58 = vadd.f32 1e-05, %v1321_v56 }
 0xc43   :  { %3085 = vrsqrt.f32 %v1324_v57 }
 0xc44   :  { %3087 = vrsqrt.f32 %v1323_v58 }
 0xc4d   :  { %v3086_v61 = vpop.eup %3085 }
 0xc4e   :  { %v3088_v62 = vpop.eup %3087  ;;  %v1328_v63 = vmul.f32 %v3086_v61, %v1312_v40 }
 0xc4f   :  { %v1327_v2 = vmul.f32 %v3088_v62, %v1311_v28 }
 0xc50   :  { %v1334_v4 = vmul.f32 %v1332_v60, %v1328_v63 }
 0xc51   :  { %v1333_v5 = vmul.f32 %v1332_v60, %v1327_v2 }
 0xc52   :  { %v1340_v7 = vadd.f32 %v1338_v3, %v1334_v4 }
 0xc53   :  { %v1339_v6 = vadd.f32 %v1338_v3, %v1333_v5 }
 0xc55   :  { %2854 = vmatprep.mubr.msk.f32.mxu1 %vm178_vm10, %v1339_v6 }
 0xc56   :  { %2855 = vmatmul.mubr.msk.f32.vlgmr.msra.gmra.mrb[14].mxu1 %vm178_vm10, %v1340_v7 }
 0xc57   :  { %2859 = vmatprep.mubr.msk.f32.mxu1 %vm3140_vm11, %v3139_v9 }
 0xd29   :  { %v3476_v8 = vpop.f32.mrb[14].mxu1 }
 0xd2a   :  { %1594 = vrot.lane.b32.xlu0 %v3476_v8, %s3142_s14  ;;  %v3480_v10 = vpop.f32.mrb[15].mxu1 }
 0xd2b   :  { %1428 = vrot.lane.b32.xlu1 %v3480_v10, %s3142_s14 }
 0xd2e   :  { %1932 = vrot.lane.b32.xlu0 %v3476_v8, %s3141_s13 }
 0xd2f   :  { %1761 = vrot.lane.b32.xlu1 %v3480_v10, %s3141_s13 }
 0xd33   :  { %1759 = vrot.lane.b32.xlu1 %v3480_v10, %s3143_s15 }
 0xd37   :  { %1930 = vrot.lane.b32.xlu1 %v3476_v8, %s3143_s15 }
 0xd9c   :  { %v1595_v12 = vpop.permute.xlu0 %1594 }
 0xd9d   :  { %2868 = vmatpush3.xpose.msk.msra.mxu0 %vm306_vm12, %v1595_v12  ;;  %v1429_v13 = vpop.permute.xlu1 %1428 }
 0xd9e   :  { %2858 = vmatpush3.xpose.msk.msra.mxu1 %vm306_vm12, %v1429_v13  ;;  %2877 = vmatprep.subr.mxu0 %v3139_v9 }
 0xd9f   :  { %2862 = vmatprep.subr.mxu1 %v3139_v9 }
 0xda0   :  { %2870 = vmatmul.mubr.msk.f32.vlgmr.msra.gmra.mrb[12].mxu0 %vm306_vm12, %v3476_v8  ;;  %v1933_v16 = vpop.permute.xlu0 %1932 }
 0xda1   :  { %2860 = vmatmul.mubr.msk.f32.vlgmr.msra.gmra.mrb[16].mxu1 %vm306_vm12, %v3480_v10  ;;  %v1762_v14 = vpop.permute.xlu1 %1761  ;;  %2879 = vmatprep.mubr.msk.f32.mxu0 %vm3140_vm11, %v3139_v9 }
 0xda2   :  { %2878 = vmatpush3.xpose.msk.msra.mxu0 %vm306_vm12, %v1762_v14  ;;  %2864 = vmatprep.mubr.msk.f32.mxu1 %vm3140_vm11, %v3139_v9 }
 0xda3   :  { %2887 = vmatprep.subr.mxu0 %v3139_v9 }
 0xda5   :  { %v1760_v15 = vpop.permute.xlu1 %1759 }
 0xda6   :  { %2880 = vmatmul.mubr.msk.f32.vlgmr.msra.gmra.mrb[14].mxu0 %vm306_vm12, %v1760_v15 }
 0xda7   :  { %2888 = vmatpush3.xpose.msk.msra.mxu0 %vm306_vm12, %v1933_v16  ;;  %2889 = vmatprep.mubr.msk.f32.mxu0 %vm3140_vm11, %v3139_v9 }
 0xda9   :  { %v1931_v17 = vpop.permute.xlu1 %1930 }
 0xdaa   :  { %2890 = vmatmul.mubr.msk.f32.vlgmr.msra.gmra.mrb[16].mxu0 %vm306_vm12, %v1931_v17  ;;  %v2616_v17 = vld [vmem:[%s3672_s3 + $0x20] sm:$0xff] }
 0xe73   :  { %v1666_v18 = vpop.f32.mrb[12].mxu0 }
 0xe74   :  { %v1670_v19 = vmul.f32 0.25, %v1666_v18  ;;  %v1500_v21 = vpop.f32.mrb[16].mxu1  ;;  %v2871_v24 = vpop.f32.mrb[13].mxu0  ;;  %v2617_v18 = vld [vmem:[%s3672_s3 + $0x28] sm:$0xff] }
 0xe75   :  { %v1504_v25 = vmul.f32 0.25, %v1500_v21  ;;  %v2861_v26 = vpop.f32.mrb[17].mxu1  ;;  %v2618_v24 = vld [vmem:[%s3672_s3 + $0x30] sm:$0xff] }
 0xe76   :  { %v1671_v30 = vsel %vm382_vm13, %v1670_v19, -inf }
 0xe77   :  { %1672 = vmax.xlane.f32.xlu1 %v1671_v30  ;;  %v1505_v31 = vsel %vm382_vm13, %v1504_v25, -inf }
 0xe78   :  { %1506 = vmax.xlane.f32.xlu0 %v1505_v31 }
 0xe79   :  { %v1833_v32 = vpop.f32.mrb[14].mxu0 }
 0xe7a   :  { %v1837_v33 = vmul.f32 0.25, %v1833_v32  ;;  %v2881_v34 = vpop.f32.mrb[15].mxu0 }
 0xe7c   :  { %v1838_v22 = vsel %vm382_vm13, %v1837_v33, -inf }
 0xe7d   :  { %1839 = vmax.xlane.f32.xlu0 %v1838_v22  ;;  %v2004_v37 = vpop.f32.mrb[16].mxu0 }
 0xe7e   :  { %v2008_v23 = vmul.f32 0.25, %v2004_v37  ;;  %v2891_v49 = vpop.f32.mrb[17].mxu0 }
 0xe80   :  { %v2009_v38 = vsel %vm382_vm13, %v2008_v23, -inf }
 0xe81   :  { %2010 = vmax.xlane.f32.xlu0 %v2009_v38 }
 0xe88   :  { %1516 = vrot.lane.b32.xlu1 %v3480_v10, %s3144_s16 }
 0xf04   :  { %v1673_v39 = vpop.xlane.xlu1 %1672 }
 0xf05   :  { %v1674_v40 = vsub.f32 %v1670_v19, %v1673_v39  ;;  %v1507_v28 = vpop.xlane.xlu0 %1506  ;;  %v3007_v19 = vpack.c.bf16 %v2617_v18, %v2616_v17  ;;  %v2111_v39 = vrot.slane %v3466_v59, %v988_v20  ;;  %v2224_v18 = vrot.slane %v3466_v59, %v1101_v0  ;;  %v2636_v0 = vld [vmem:[%s3674_s5 + $0x70] sm:$0xff] }
 0xf06   :  { %v1508_v41 = vsub.f32 %v1504_v25, %v1507_v28 }
 0xf07   :  { %v1675_v42 = vmul.f32 1.442695, %v1674_v40  ;;  %3008 = vmatprep.subr.bf16.mxu0 %v3007_v19 }
 0xf08   :  { %v1509_v29 = vmul.f32 1.442695, %v1508_v41  ;;  %v1517_v43 = vpop.permute.xlu1 %1516  ;;  %3010 = vmatpush3.bf16.msra.mxu0 %v3007_v19 }
 0xf09   :  { %3089 = vpow2.f32 %v1675_v42  ;;  %2863 = vmatpush3.msra.mxu1 %v1517_v43 }
 0xf0a   :  { %3091 = vpow2.f32 %v1509_v29  ;;  %v1840_v44 = vpop.xlane.xlu0 %1839  ;;  %2872 = vmatprep.subr.mxu1 %v3139_v9 }
 0xf0b   :  { %v1841_v45 = vsub.f32 %v1837_v33, %v1840_v44 }
 0xf0d   :  { %v1842_v46 = vmul.f32 1.442695, %v1841_v45 }
 0xf0e   :  { %v2011_v47 = vpop.xlane.xlu0 %2010 }
 0xf0f   :  { %3093 = vpow2.f32 %v1842_v46  ;;  %v2012_v51 = vsub.f32 %v2008_v23, %v2011_v47 }
 0xf11   :  { %v2013_v52 = vmul.f32 1.442695, %v2012_v51 }
 0xf13   :  { %v3090_v53 = vpop.eup %3089  ;;  %3095 = vpow2.f32 %v2013_v52 }
 0xf14   :  { %v3092_v54 = vpop.eup %3091  ;;  %v1677_v55 = vsel %vm382_vm13, %v3090_v53, 0.0 }
 0xf15   :  { %1678 = vadd.xlane.f32.xlu0 %v1677_v55  ;;  %v1511_v56 = vsel %vm382_vm13, %v3092_v54, 0.0 }
 0xf16   :  { %1512 = vadd.xlane.f32.xlu1 %v1511_v56  ;;  %v2622_v56 = vld [vmem:[%s3673_s4 + $0x20] sm:$0xff] }
 0xf19   :  { %v3094_v57 = vpop.eup %3093 }
 0xf1a   :  { %v1844_v58 = vsel %vm382_vm13, %v3094_v57, 0.0 }
 0xf1b   :  { %1845 = vadd.xlane.f32.xlu1 %v1844_v58 }
 0xf1d   :  { %v3096_v60 = vpop.eup %3095 }
 0xf1e   :  { %v2015_v61 = vsel %vm382_vm13, %v3096_v60, 0.0 }
 0xf1f   :  { %2016 = vadd.xlane.f32.xlu0 %v2015_v61  ;;  %v2625_v61 = vld [vmem:[%s3673_s4 + $0x38] sm:$0xff] }
 0xf2c   :  { %1849 = vrot.lane.b32.xlu1 %v3480_v10, %s3145_s17 }
 0xf30   :  { %2020 = vrot.lane.b32.xlu1 %v3476_v8, %s3145_s17 }
 0xf35   :  { %1682 = vrot.lane.b32.xlu0 %v3476_v8, %s3144_s16 }
 0xfa2   :  { %v1679_v62 = vpop.xlane.xlu0 %1678 }
 0xfa3   :  { %v1513_v63 = vpop.xlane.xlu1 %1512 }
 0xfa4   :  { %3097 = vrcp.f32 %v1513_v63  ;;  %v2630_v63 = vld [vmem:[%s3674_s5 + $0x40] sm:$0xff] }
 0xfa5   :  { %3099 = vrcp.f32 %v1679_v62 }
 0xfa8   :  { %v1846_v2 = vpop.xlane.xlu1 %1845 }
 0xfa9   :  { %3101 = vrcp.f32 %v1846_v2  ;;  %v2631_v2 = vld [vmem:[%s3674_s5 + $0x48] sm:$0xff] }
 0xfac   :  { %v2017_v3 = vpop.xlane.xlu0 %2016  ;;  %v1850_v8 = vpop.permute.xlu1 %1849 }
 0xfad   :  { %3103 = vrcp.f32 %v2017_v3  ;;  %v2632_v3 = vld [vmem:[%s3674_s5 + $0x50] sm:$0xff] }
 0xfae   :  { %v3098_v4 = vpop.eup %3097 }
 0xfaf   :  { %v1515_v5 = vmul.f32 %v3098_v4, %v3092_v54  ;;  %v3100_v6 = vpop.eup %3099  ;;  %v3023_v4 = vpack.c.bf16 %v2631_v2, %v2630_v63 }
 0xfb0   :  { %v1683_v7 = vpop.permute.xlu0 %1682  ;;  %v1681_v10 = vmul.f32 %v3100_v6, %v3090_v53  ;;  %v2021_v15 = vpop.permute.xlu1 %2020 }
 0xfb1   :  { %2865 = vmatmul.mubr.msk.f32.vlgmr.msra.gmra.mrb[18].mxu1 %vm382_vm13, %v1515_v5  ;;  %v2633_v5 = vld [vmem:[%s3674_s5 + $0x58] sm:$0xff] }
 0xfb2   :  { %2873 = vmatpush3.msra.mxu1 %v1683_v7  ;;  %2874 = vmatprep.mubr.msk.f32.mxu1 %vm3140_vm11, %v3139_v9  ;;  %v3027_v6 = vpack.c.bf16 %v2633_v5, %v2632_v3  ;;  %v2634_v7 = vld [vmem:[%s3674_s5 + $0x60] sm:$0xff] }
 0xfb3   :  { %2882 = vmatprep.subr.mxu1 %v3139_v9  ;;  %v3102_v12 = vpop.eup %3101  ;;  %v2425_v5 = vld [vmem:[%s3677_s8] sm:$0x3]  ;;  %s3147_s8 = smov [#allocation3]  }
 0xfb4   :  { %v1848_v13 = vmul.f32 %v3102_v12, %v3094_v57  ;;  %v2623_v57 = vld [vmem:[%s3673_s4 + $0x28] sm:$0xff]  ;;  %s2562_s23 = sshll.u32 %s3147_s8, 4  ;;  %s2563_s23 = int_to_ptr.vmem [resolvable:$true] %s2562_s23 }
 0xfb5   :  { %2875 = vmatmul.mubr.msk.f32.vlgmr.msra.gmra.mrb[20].mxu1 %vm382_vm13, %v1681_v10  ;;  %v3015_v58 = vpack.c.bf16 %v2623_v57, %v2622_v56  ;;  %v2635_v10 = vld [vmem:[%s3674_s5 + $0x68] sm:$0xff]  ;;  %v2466_v57 = vld [vmem:[%s3678_s9 + $0x10] sm:$0xff]  ;;  %s3113_s24 = scalar_lea.vmem %s2563_s23, 256  ;;  %p3118_p1 = scmp.lt.s32.totalorder %s2563_s23, %s2563_s23 }
 0xfb6   :  { %2883 = vmatpush3.msra.mxu1 %v1850_v8  ;;  %2884 = vmatprep.mubr.msk.f32.mxu1 %vm3140_vm11, %v3139_v9  ;;  %v3031_v8 = vpack.c.bf16 %v2635_v10, %v2634_v7  ;;  %p3114_p0 = scmp.ne.s32.totalorder %s2563_s23, %s3113_s24  ;;  %p3119_p2 = scmp.lt.s32.totalorder %s3113_s24, %s3113_s24 }
 0xfb7   :  { %2892 = vmatprep.subr.mxu1 %v3139_v9  ;;  %v3104_v14 = vpop.eup %3103 }
 0xfb8   :  { %v2019_v16 = vmul.f32 %v3104_v14, %v3096_v60  ;;  %v2624_v60 = vld [vmem:[%s3673_s4 + $0x30] sm:$0xff]  ;;  %p3120_p3 = por %p3119_p2, %p3118_p1 }
 0xfb9   :  { %2885 = vmatmul.mubr.msk.f32.vlgmr.msra.gmra.mrb[22].mxu1 %vm382_vm13, %v1848_v13  ;;  %v3019_v62 = vpack.c.bf16 %v2625_v61, %v2624_v60 }
 0xfba   :  { %2893 = vmatpush3.msra.mxu1 %v2021_v15  ;;  %2894 = vmatprep.mubr.msk.f32.mxu1 %vm3140_vm11, %v3139_v9  ;;  %v2619_v9 = vld [vmem:[%s3672_s3 + $0x38] sm:$0xff]  ;;  %p3121_p4 = pnand %p3120_p3, %p3114_p0 }
 0xfbb   :  { %v3011_v26 = vpack.c.bf16 %v2619_v9, %v2618_v24  ;;  %3016 = vmatprep.subr.bf16.mxu1 %v3015_v58  ;;  %v2230_v24 = vrot.slane %v3466_v59, %v1107_v1  ;;  %v2627_v1 = vld [vmem:[%s3676_s7 + $0x1] ss:$0 sm:$0xff] }
 0xfbd   :  { %2895 = vmatmul.mubr.msk.f32.vlgmr.msra.gmra.mrb[24].mxu1 %vm382_vm13, %v2019_v16  ;;  %3012 = vmatprep.subr.bf16.mxu0 %v3011_v26 }
 0xfbe   :  { %3014 = vmatpush3.bf16.msra.mxu0 %v3011_v26  ;;  %3018 = vmatpush3.bf16.msra.mxu1 %v3015_v58  ;;  %v2467_v58 = vld [vmem:[%s3678_s9 + $0x18] sm:$0xff] }
 0xfbf   :  { %3020 = vmatprep.subr.bf16.mxu1 %v3019_v62  ;;  %3024 = vmatprep.subr.bf16.mxu0 %v3023_v4  ;;  %v3043_v60 = vpack.c.bf16 %v2467_v58, %v2466_v57 }
 0xfc2   :  { %3022 = vmatpush3.bf16.msra.mxu1 %v3019_v62 }
0x1084   :  { %v1588_v21 = vpop.f32.mrb[18].mxu1 }
0x1085   :  { %1592 = vst.msk [vmem:[#allocation2] sm:$0xff] %vm306_vm12, %v1588_v21  ;;  %v2866_v25 = vpop.f32.mrb[19].mxu1 }
0x1088   :  { %v1754_v30 = vpop.f32.mrb[20].mxu1 }
0x1089   :  { %1758 = vst.msk [vmem:[#allocation2 + $0x8] sm:$0xff] %vm306_vm12, %v1754_v30  ;;  %v2876_v31 = vpop.f32.mrb[21].mxu1 }
0x108c   :  { %v1921_v32 = vpop.f32.mrb[22].mxu1 }
0x108d   :  { %1926 = vrot.lane.b32.xlu0 %v1921_v32, %s3146_s1  ;;  %v2886_v33 = vpop.f32.mrb[23].mxu1 }
0x108e   :  { %v2637_v33 = vld [vmem:[%s3674_s5 + $0x78] sm:$0xff] }
0x1090   :  { %v2092_v34 = vpop.f32.mrb[24].mxu1 }
0x1091   :  { %2097 = vrot.lane.b32.xlu1 %v2092_v34, %s3146_s1  ;;  %v2896_v22 = vpop.f32.mrb[25].mxu1  ;;  %v3035_v34 = vpack.c.bf16 %v2637_v33, %v2636_v0 }
0x10ff   :  { %v1927_v37 = vpop.permute.xlu0 %1926 }
0x1100   :  { %1929 = vst.msk [vmem:[#allocation2] sm:$0xff] %vm807_vm14, %v1927_v37 }
0x1103   :  { %v2098_v23 = vpop.permute.xlu1 %2097 }
0x1104   :  { %2100 = vst.msk [vmem:[#allocation2 + $0x8] sm:$0xff] %vm807_vm14, %v2098_v23 }
0x1107   :  { %v2101_v49 = vld [vmem:[#allocation2] sm:$0xff] }
0x1108   :  { %2905 = vmatprep.mubr.msk.f32.mxu0 %vm178_vm10, %v2101_v49 }
0x110b   :  { %v2102_v38 = vld [vmem:[#allocation2 + $0x8] sm:$0xff] }
0x110c   :  { %2906 = vmatmul.mubr.msk.f32.vlgmr.msra.gmra.mrb[18].mxu0 %vm178_vm10, %v2102_v38 }
0x110d   :  { %3026 = vmatpush3.bf16.msra.mxu0 %v3023_v4 }
0x110e   :  { %3028 = vmatprep.subr.bf16.mxu0 %v3027_v6 }
0x1111   :  { %3030 = vmatpush3.bf16.msra.mxu0 %v3027_v6  ;;  %v2455_v6 = vrot.slane %v2425_v5, %v3256_v48 }
0x1112   :  { %3032 = vmatprep.subr.bf16.mxu0 %v3031_v8 }
0x1115   :  { %3034 = vmatpush3.bf16.msra.mxu0 %v3031_v8 }
0x1116   :  { %3036 = vmatprep.subr.bf16.mxu0 %v3035_v34 }
0x1119   :  { %3038 = vmatpush3.bf16.msra.mxu0 %v3035_v34 }
0x11df   :  { %v2907_v40 = vpop.f32.mrb[18].mxu0 }
0x11e0   :  { %v2190_v28 = vadd.f32 %v2907_v40, %v2111_v39  ;;  %v2184_v41 = vpop.f32.mrb[19].mxu0  ;;  %v2341_v40 = vrot.slane %v3466_v59, %v1215_v27 }
0x11e1   :  { %v2185_v42 = vadd.f32 %v2184_v41, %v2111_v39 }
0x11e2   :  { %v3564_v29 = vadd.f32 %v2190_v28, %v3437_v35 }
0x11e3   :  { %v3567_v43 = vadd.f32 %v2185_v42, %v3440_v36 }
0x11e4   :  { %v2198_v44 = vsel %vm178_vm10, %v3564_v29, 0.0 }
0x11e5   :  { %2199 = vadd.xlane.f32.xlu1 %v2198_v44  ;;  %v2195_v45 = vsel %vm178_vm10, %v3567_v43, 0.0 }
0x11e6   :  { %2196 = vadd.xlane.f32.xlu0 %v2195_v45 }
0x1272   :  { %v2200_v46 = vpop.xlane.xlu1 %2199 }
0x1273   :  { %v2202_v20 = vmul.f32 0.03125, %v2200_v46  ;;  %v2197_v47 = vpop.xlane.xlu0 %2196 }
0x1274   :  { %v2201_v51 = vmul.f32 0.03125, %v2197_v47 }
0x1275   :  { %v2204_v52 = vsub.f32 %v3564_v29, %v2202_v20 }
0x1276   :  { %v2203_v35 = vsub.f32 %v3567_v43, %v2201_v51 }
0x1277   :  { %v2206_v54 = vmul.f32 %v2204_v52, %v2204_v52 }
0x1278   :  { %v2205_v53 = vmul.f32 %v2203_v35, %v2203_v35 }
0x1279   :  { %v2210_v55 = vsel %vm178_vm10, %v2206_v54, 0.0 }
0x127a   :  { %v2207_v36 = vsel %vm178_vm10, %v2205_v53, 0.0 }
0x127b   :  { %2208 = vadd.xlane.f32.xlu0 %v2207_v36 }
0x127f   :  { %2211 = vadd.xlane.f32.xlu0 %v2210_v55  ;;  %v2465_v55 = vld [vmem:[%s3678_s9 + $0x8] sm:$0xff] }
0x1308   :  { %v2209_v12 = vpop.xlane.xlu0 %2208 }
0x1309   :  { %v2213_v13 = vmul.f32 0.03125, %v2209_v12 }
0x130b   :  { %v2215_v14 = vadd.f32 1e-05, %v2213_v13  ;;  %v2461_v13 = vrot.slane %v2425_v5, %v3264_v50 }
0x130c   :  { %v2212_v15 = vpop.xlane.xlu0 %2211 }
0x130d   :  { %3105 = vrsqrt.f32 %v2215_v14  ;;  %v2214_v16 = vmul.f32 0.03125, %v2212_v15 }
0x130f   :  { %v2216_v17 = vadd.f32 1e-05, %v2214_v16 }
0x1311   :  { %3107 = vrsqrt.f32 %v2216_v17 }
0x1317   :  { %v3106_v19 = vpop.eup %3105 }
0x1318   :  { %v2219_v21 = vmul.f32 %v3106_v19, %v2203_v35 }
0x131a   :  { %v2225_v9 = vmul.f32 %v2224_v18, %v2219_v21 }
0x131b   :  { %v3108_v25 = vpop.eup %3107 }
0x131c   :  { %v2220_v26 = vmul.f32 %v3108_v25, %v2204_v52  ;;  %v2231_v30 = vadd.f32 %v2230_v24, %v2225_v9 }
0x131e   :  { %v2226_v31 = vmul.f32 %v2224_v18, %v2220_v26  ;;  %2916 = vmatprep.mubr.msk.f32.mxu1 %vm178_vm10, %v2231_v30  ;;  %v2640_v18 = vld [vmem:[%s3678_s9 + $0x20] ss:$0 sm:$0xff] }
0x1320   :  { %v2232_v32 = vadd.f32 %v2230_v24, %v2226_v31 }
0x1322   :  { %2917 = vmatmul.mubr.msk.f32.vlgmr.msra.gmra.mrb[26].mxu1 %vm178_vm10, %v2232_v32 }
0x13f5   :  { %v2918_v22 = vpop.f32.mrb[26].mxu1 }
0x13f6   :  { %v2324_v37 = vadd.f32 %v2918_v22, %v2627_v1  ;;  %v2318_v23 = vpop.f32.mrb[27].mxu1 }
0x13f7   :  { %v2319_v49 = vadd.f32 %v2627_v1, %v2318_v23 }
0x13f8   :  { %v2328_v39 = vmax.f32 %v2324_v37, 0.0 }
0x13f9   :  { %v2327_v38 = vmax.f32 %v2319_v49, 0.0 }
0x13fb   :  { %2935 = vmatprep.mubr.msk.f32.mxu0 %vm1217_vm15, %v2327_v38 }
0x13fc   :  { %2936 = vmatmul.mubr.msk.f32.vlgmr.msra.gmra.mrb[20].mxu0 %vm1217_vm15, %v2328_v39 }
0x14cf   :  { %v2937_v28 = vpop.f32.mrb[20].mxu0 }
0x14d0   :  { %v2420_v41 = vadd.f32 %v2937_v28, %v2341_v40  ;;  %v2414_v42 = vpop.f32.mrb[21].mxu0 }
0x14d1   :  { %v2415_v44 = vadd.f32 %v2414_v42, %v2341_v40 }
0x14d2   :  { %v2424_v45 = vadd.f32 %v2420_v41, %v3564_v29 }
0x14d3   :  { %v2423_v46 = vadd.f32 %v2415_v44, %v3567_v43  ;;  %v2464_v43 = vld [vmem:[%s3678_s9] sm:$0xff] }
0x14d4   :  { %v2429_v20 = vsel %vm178_vm10, %v2424_v45, 0.0  ;;  %v3039_v56 = vpack.c.bf16 %v2465_v55, %v2464_v43 }
0x14d5   :  { %2430 = vadd.xlane.f32.xlu0 %v2429_v20  ;;  %v2426_v47 = vsel %vm178_vm10, %v2423_v46, 0.0 }
0x14d6   :  { %2427 = vadd.xlane.f32.xlu1 %v2426_v47  ;;  %3040 = vmatprep.subr.bf16.mxu1 %v3039_v56 }
0x14d7   :  { %3042 = vmatpush3.bf16.msra.mxu1 %v3039_v56 }
0x14d8   :  { %3044 = vmatprep.subr.bf16.mxu1 %v3043_v60 }
0x14db   :  { %3046 = vmatpush3.bf16.msra.mxu1 %v3043_v60 }
0x1562   :  { %v2431_v51 = vpop.xlane.xlu0 %2430 }
0x1563   :  { %v2433_v52 = vmul.f32 0.03125, %v2431_v51  ;;  %v2428_v35 = vpop.xlane.xlu1 %2427 }
0x1564   :  { %v2432_v11 = vmul.f32 0.03125, %v2428_v35 }
0x1565   :  { %v2435_v53 = vsub.f32 %v2424_v45, %v2433_v52 }
0x1566   :  { %v2434_v27 = vsub.f32 %v2423_v46, %v2432_v11 }
0x1567   :  { %v2437_v59 = vmul.f32 %v2435_v53, %v2435_v53 }
0x1568   :  { %v2436_v36 = vmul.f32 %v2434_v27, %v2434_v27 }
0x1569   :  { %v2441_v54 = vsel %vm178_vm10, %v2437_v59, 0.0 }
0x156a   :  { %2442 = vadd.xlane.f32.xlu0 %v2441_v54  ;;  %v2438_v29 = vsel %vm178_vm10, %v2436_v36, 0.0 }
0x156b   :  { %2439 = vadd.xlane.f32.xlu1 %v2438_v29 }
0x15f7   :  { %v2443_v61 = vpop.xlane.xlu0 %2442 }
0x15f8   :  { %v2445_v62 = vmul.f32 0.03125, %v2443_v61  ;;  %v2440_v63 = vpop.xlane.xlu1 %2439 }
0x15f9   :  { %v2444_v2 = vmul.f32 0.03125, %v2440_v63 }
0x15fa   :  { %v2447_v3 = vadd.f32 1e-05, %v2445_v62 }
0x15fb   :  { %v2446_v4 = vadd.f32 1e-05, %v2444_v2 }
0x15fc   :  { %3109 = vrsqrt.f32 %v2447_v3 }
0x15fd   :  { %3111 = vrsqrt.f32 %v2446_v4 }
0x1606   :  { %v3110_v7 = vpop.eup %3109 }
0x1607   :  { %v3112_v10 = vpop.eup %3111  ;;  %v2451_v8 = vmul.f32 %v3110_v7, %v2435_v53 }
0x1608   :  { %v2450_v12 = vmul.f32 %v3112_v10, %v2434_v27 }
0x1609   :  { %v2457_v14 = vmul.f32 %v2455_v6, %v2451_v8 }
0x160a   :  { %v2456_v15 = vmul.f32 %v2455_v6, %v2450_v12 }
0x160b   :  { %v2463_v17 = vadd.f32 %v2461_v13, %v2457_v14 }
0x160c   :  { %v2462_v16 = vadd.f32 %v2461_v13, %v2456_v15 }
0x160e   :  { %2946 = vmatprep.mubr.msk.f32.mxu1 %vm178_vm10, %v2462_v16 }
0x160f   :  { %2947 = vmatmul.mubr.msk.f32.vlgmr.msra.gmra.mrb[28].mxu1 %vm178_vm10, %v2463_v17 }
0x16e2   :  { %v2948_v48 = vpop.f32.mrb[28].mxu1 }
0x16e3   :  { %v2551_v19 = vadd.f32 %v2948_v48, %v2640_v18  ;;  %v2545_v21 = vpop.f32.mrb[29].mxu1 }
0x16e4   :  { %v2546_v24 = vadd.f32 %v2640_v18, %v2545_v21 }
0x16e5   :  { %2556 = vst.msk [vmem:[#allocation3 + $0x8] sm:$0xff] %vm2554_vm0, %v2551_v19 }
0x16e6   :  { %2555 = vst.msk [vmem:[#allocation3] sm:$0xff] %vm2554_vm0, %v2546_v24 }
0x16e7   :  { %3124 = shalt.err (!%p3121_p4)
}
0x16e8   :  { %s3125_s9 = scalar_lea.hbm %s3679_s10, 256 }
0x16e9   :  { %p3126_p5 = scmp.ne.s32.totalorder %s3679_s10, %s3125_s9  ;;  %p3129_p6 = scmp.lt.u32.totalorder %s3125_s9, %s3679_s10 }
0x16eb   :  { %p3131_p7 = pnand %p3129_p6, %p3126_p5 }
0x16ed   :  { %3134 = shalt.err (!%p3131_p7)
}
0x16ee   :  { %s3148_s2 = smov 128   ;;  %s3149_s6 = smov 8  }
0x16ef   :  { %2568 = dma.vmem_to_hbm [thread:$0]  %s2563_s23, 256, %s3679_s10, [#allocation4], %s3148_s2, %s3148_s2, %s3149_s6  }
0x16f0   :  { %3135 = dma.done.wait [#allocation4], 256  }
0x16f1   :  { %3136 = vsyncadd [#allocation4], 4294967040 }
0x16f2   :  { %2572 = vsyncpa [#allocation4], 1 }

</bundles_post_ra>
